<compile_context>
chip_gen: v7x
topology: tpu7x:2x2x1
jax: 0.10.0
libtpu: 0.0.40
codegen_flags: <defaults>
</compile_context>

<pallas_src>
import functools

import jax
import jax.numpy as jnp
import numpy as np
from jax.experimental import pallas as pl
from jax.experimental.pallas import tpu as pltpu


def _round_up(x, m):
    return (x + m - 1) // m * m


# ----------------------------------------------------------------------------
# Pallas kernel: LSTM recurrence over one (batch-block, time-block) tile.
#   grid = (num_batch_blocks ["parallel"], num_time_blocks ["arbitrary"])
#   inputs : gx  (T_blk, B_blk, 4H) bf16  -- precomputed x@W_ih^T + bias
#            whh (H, 4H) bf16 in HBM (memory_space=pl.ANY, copied once)
#   output : y   (T_blk, B_blk, H) f32
#   scratch: h, c (B_blk, H) f32 carried across time blocks; whh VMEM copy.
# ----------------------------------------------------------------------------
def _lstm_recurrence_kernel(gx_ref, whh_hbm, o_ref, h_scr, c_scr, whh_scr, *,
                            t_blk, hidden):
    t_idx = pl.program_id(1)          # time-block index (sequential axis)

    @pl.when(t_idx == 0)
    def _init():
        # Fresh recurrent state for this batch block, and a single-buffered
        # copy of the loop-invariant recurrent weight into VMEM scratch
        # (fetched once per batch block, not double-buffered every grid step).
        h_scr[...] = jnp.zeros_like(h_scr)
        c_scr[...] = jnp.zeros_like(c_scr)
        pltpu.sync_copy(whh_hbm, whh_scr)

    whh = whh_scr[...]                # (H, 4H) bf16, loaded once per block

    def step(i, carry):
        h, c = carry                  # f32 (B_blk, H)
        # Only the recurrent matmul sits on the serial path (bf16 operands,
        # f32 accumulation); the input projection was hoisted into gx.
        gates = gx_ref[i].astype(jnp.float32) + jnp.dot(
            h.astype(whh.dtype), whh, preferred_element_type=jnp.float32)
        i_g = jax.nn.sigmoid(gates[:, 0 * hidden:1 * hidden])
        f_g = jax.nn.sigmoid(gates[:, 1 * hidden:2 * hidden])
        g_g = jnp.tanh(gates[:, 2 * hidden:3 * hidden])
        o_g = jax.nn.sigmoid(gates[:, 3 * hidden:4 * hidden])
        c = f_g * c + i_g * g_g
        h = o_g * jnp.tanh(c)
        o_ref[i] = h.astype(o_ref.dtype)
        return (h, c)

    h_fin, c_fin = jax.lax.fori_loop(
        0, t_blk, step, (h_scr[...], c_scr[...]), unroll=True)
    h_scr[...] = h_fin
    c_scr[...] = c_fin


def _lstm_recurrence(gx, whh_t, *, hidden, t_blk, b_blk):
    """gx: (Tp, Bp, 4H) bf16 (padded);  whh_t: (H, 4H) bf16. -> (Tp, Bp, H) f32."""
    Tp, Bp, G = gx.shape
    assert G == 4 * hidden and Tp % t_blk == 0 and Bp % b_blk == 0
    n_b, n_t = Bp // b_blk, Tp // t_blk
    kernel = functools.partial(_lstm_recurrence_kernel,
                               t_blk=t_blk, hidden=hidden)
    return pl.pallas_call(
        kernel,
        out_shape=jax.ShapeDtypeStruct((Tp, Bp, hidden), jnp.float32),
        grid_spec=pltpu.PrefetchScalarGridSpec(
            num_scalar_prefetch=0,
            grid=(n_b, n_t),
            in_specs=[
                pl.BlockSpec((t_blk, b_blk, 4 * hidden),
                             lambda b, t: (t, b, 0)),         # gates_x stream
                pl.BlockSpec(memory_space=pl.ANY),            # W_hh^T (raw HBM)
            ],
            out_specs=pl.BlockSpec((t_blk, b_blk, hidden),
                                   lambda b, t: (t, b, 0)),
            scratch_shapes=[
                pltpu.VMEM((b_blk, hidden), jnp.float32),        # h state
                pltpu.VMEM((b_blk, hidden), jnp.float32),        # c state
                pltpu.VMEM((hidden, 4 * hidden), jnp.bfloat16),  # W_hh^T (1 copy)
            ],
        ),
        compiler_params=pltpu.CompilerParams(
            # batch blocks independent -> "parallel" (uses both TCs on v7x);
            # time carries recurrent state -> "arbitrary" (sequential).
            dimension_semantics=("parallel", "arbitrary"),
            vmem_limit_bytes=48 * 1024 * 1024,   # explicit budget, fits v7x 64MiB
        ),
    )(gx, whh_t)


def _run_layer_direction(x_tm, w_ih_t, w_hh_t, bias, *, hidden, t_blk, b_blk,
                         reverse):
    """One LSTM direction. x_tm: (T, Bp, D) f32 (batch already padded)."""
    T, Bp, D = x_tm.shape
    # Hoisted input projection: one large (T*Bp, D) x (D, 4H) bf16 MXU matmul
    # with f32 accumulation; bias folded in here (not per step in the kernel).
    gx = jnp.dot(x_tm.reshape(T * Bp, D).astype(jnp.bfloat16), w_ih_t,
                 preferred_element_type=jnp.float32) + bias
    gx = gx.reshape(T, Bp, 4 * hidden).astype(jnp.bfloat16)
    if reverse:                        # backward direction: flip time
        gx = gx[::-1]
    Tp = _round_up(T, t_blk)
    if Tp != T:                        # pad at the END (causal -> harmless)
        gx = jnp.pad(gx, ((0, Tp - T), (0, 0), (0, 0)))
    y = _lstm_recurrence(gx, w_hh_t, hidden=hidden, t_blk=t_blk, b_blk=b_blk)
    y = y[:T]
    if reverse:
        y = y[::-1]
    return y                           # (T, Bp, H) f32


# ----------------------------------------------------------------------------
# lockedDropoutLSTM (layered, optionally bidirectional)
# ----------------------------------------------------------------------------
class LockedDropoutLSTMPallas:
    def __init__(self, input_dim, lstm_dim=512, lstm_bi=False, lstm_layers=1,
                 dropout=0.0, *, key, t_blk=8, b_blk=8):
        assert b_blk % 8 == 0, "batch block must be a sublane multiple"
        self.input_dim = input_dim
        self.lstm_dim = lstm_dim          # best perf when a multiple of 128
        self.lstm_bi = lstm_bi
        self.lstm_layers = lstm_layers
        self.dropout = dropout
        self.t_blk = t_blk
        self.b_blk = b_blk
        self.num_dir = 2 if lstm_bi else 1

        k = 1.0 / np.sqrt(lstm_dim)
        self.layers = []
        for layer in range(lstm_layers):
            d_in = input_dim if layer == 0 else lstm_dim * self.num_dir
            dirs = []
            for _ in range(self.num_dir):
                key, k1, k2, k3, k4 = jax.random.split(key, 5)
                w_ih = jax.random.uniform(k1, (4 * lstm_dim, d_in),
                                          jnp.float32, -k, k)
                w_hh = jax.random.uniform(k2, (4 * lstm_dim, lstm_dim),
                                          jnp.float32, -k, k)
                b_ih = jax.random.uniform(k3, (4 * lstm_dim,), jnp.float32, -k, k)
                b_hh = jax.random.uniform(k4, (4 * lstm_dim,), jnp.float32, -k, k)
                dirs.append(dict(
                    w_ih_t=w_ih.T.astype(jnp.bfloat16),   # (d_in, 4H) bf16 MXU operand
                    w_hh_t=w_hh.T.astype(jnp.bfloat16),   # (H, 4H)   bf16 MXU operand
                    bias=(b_ih + b_hh),                   # (4H,) f32
                ))
            self.layers.append(dirs)

    def __call__(self, x, *, training=False, dropout_key=None):
        """x: (B, T, input_dim) batch-first. Returns (B, T, H * num_dir)."""
        B, T, _ = x.shape
        Bp = _round_up(B, self.b_blk)                   # sublane-aligned batch
        x_tm = jnp.transpose(x, (1, 0, 2))              # time-major (T, B, D)
        if Bp != B:
            x_tm = jnp.pad(x_tm, ((0, 0), (0, Bp - B), (0, 0)))

        for dirs in self.layers:
            outs = [
                _run_layer_direction(
                    x_tm, p["w_ih_t"], p["w_hh_t"], p["bias"],
                    hidden=self.lstm_dim, t_blk=self.t_blk, b_blk=self.b_blk,
                    reverse=(di == 1))
                for di, p in enumerate(dirs)
            ]
            y = outs[0] if len(outs) == 1 else jnp.concatenate(outs, axis=-1)
            # Locked dropout on the layer output (same mask for every time
            # step / batch element).  Applied here, OFF the per-step serial
            # path; XLA fuses it into the next layer's input projection.
            if training and self.dropout > 0.0:
                dropout_key, sub = jax.random.split(dropout_key)
                keep = jax.random.bernoulli(
                    sub, 1.0 - self.dropout, (1, 1, y.shape[-1])).astype(y.dtype)
                y = y * keep / (1.0 - self.dropout)
            x_tm = y
        out = x_tm[:, :B]                                # drop batch padding
        return jnp.transpose(out, (1, 0, 2))             # back to (B, T, *)


# ----------------------------------------------------------------------------
# PTEmbReg: embedding -> locked-dropout biLSTM -> last step -> concat -> Linear
# ----------------------------------------------------------------------------
class PTEmbRegPallas:
    def __init__(self, num_chr, pad_idx, emb_dim=128, emb_dropout=0.3,
                 lstm_hidden_dim=256, lstm_num_layers=2, lstm_bidirectional=True,
                 lstm_dropout=0.3, use_lockedlstm=True, interim_linear_dim=32,
                 concat_wlen=True, concat_nsyl=True, *, key, t_blk=8, b_blk=8):
        assert use_lockedlstm, "only the lockedDropoutLSTM path is implemented"
        assert interim_linear_dim > 0  # mirrors the reference module's branch
        self.emb_dropout = emb_dropout
        self.concat_wlen = concat_wlen
        self.concat_nsyl = concat_nsyl

        key, k_emb, k_lstm, k_w, k_b = jax.random.split(key, 5)
        emb = jax.random.normal(k_emb, (num_chr, emb_dim), jnp.float32)
        self.emb_table = emb.at[pad_idx].set(0.0)        # padding_idx row = 0

        self.run = LockedDropoutLSTMPallas(
            input_dim=emb_dim, lstm_dim=lstm_hidden_dim,
            lstm_bi=lstm_bidirectional, lstm_layers=lstm_num_layers,
            dropout=lstm_dropout, key=k_lstm, t_blk=t_blk, b_blk=b_blk)

        extra = int(concat_wlen) + int(concat_nsyl)
        cls_in = lstm_hidden_dim * (1 + int(lstm_bidirectional)) + extra
        kb = 1.0 / np.sqrt(cls_in)
        self.cls_w = jax.random.uniform(k_w, (cls_in, 1), jnp.float32, -kb, kb)
        self.cls_b = jax.random.uniform(k_b, (1,), jnp.float32, -kb, kb)

    def __call__(self, chrs, wlens, nsyls, *, training=False, key=None):
        # embedding gather: plain-JAX glue (no kernel win at these sizes)
        x = jnp.take(self.emb_table, chrs, axis=0)       # (B, T, E)
        if training and self.emb_dropout > 0.0:
            key, sub = jax.random.split(key)
            keep = jax.random.bernoulli(
                sub, 1.0 - self.emb_dropout, (1, 1, x.shape[-1])).astype(x.dtype)
            x = x * keep / (1.0 - self.emb_dropout)
        x = self.run(x, training=training, dropout_key=key)   # (B, T, 2H)
        x = x[:, -1, :]                                   # last time step
        feats = [x]
        if self.concat_wlen:
            feats.append(wlens)
        if self.concat_nsyl:
            feats.append(nsyls)
        x = jnp.concatenate(feats, axis=-1)
        return x @ self.cls_w + self.cls_b                # (B, 1)


# ----------------------------------------------------------------------------
# Pure-JAX (lax.scan) reference mirroring the kernel's bf16-operand /
# f32-accumulate policy.  Eval mode (no dropout).
# ----------------------------------------------------------------------------
def _reference_forward(model, chrs, wlens, nsyls):
    out = jnp.take(model.emb_table, chrs, axis=0)        # (B, T, E)
    H = model.run.lstm_dim
    for dirs in model.run.layers:
        ys = []
        for di, p in enumerate(dirs):
            inp = out[:, ::-1] if di == 1 else out
            x_tm = jnp.transpose(inp, (1, 0, 2))         # (T, B, D)
            gx = jnp.dot(x_tm.astype(jnp.bfloat16), p["w_ih_t"],
                         preferred_element_type=jnp.float32) + p["bias"]
            gx = gx.astype(jnp.bfloat16)

            def step(carry, g_t, p=p):
                h, c = carry
                gates = g_t.astype(jnp.float32) + jnp.dot(
                    h.astype(jnp.bfloat16), p["w_hh_t"],
                    preferred_element_type=jnp.float32)
                i = jax.nn.sigmoid(gates[:, 0 * H:1 * H])
                f = jax.nn.sigmoid(gates[:, 1 * H:2 * H])
                g = jnp.tanh(gates[:, 2 * H:3 * H])
                o = jax.nn.sigmoid(gates[:, 3 * H:4 * H])
                c = f * c + i * g
                h = o * jnp.tanh(c)
                return (h, c), h

            B = x_tm.shape[1]
            init = (jnp.zeros((B, H), jnp.float32), jnp.zeros((B, H), jnp.float32))
            _, y_tm = jax.lax.scan(step, init, gx)
            y = jnp.transpose(y_tm, (1, 0, 2))
            if di == 1:
                y = y[:, ::-1]
            ys.append(y)
        out = ys[0] if len(ys) == 1 else jnp.concatenate(ys, axis=-1)
    last = out[:, -1, :]
    feats = [last]
    if model.concat_wlen:
        feats.append(wlens)
    if model.concat_nsyl:
        feats.append(nsyls)
    z = jnp.concatenate(feats, axis=-1)
    return z @ model.cls_w + model.cls_b


if __name__ == "__main__":
    # Small shapes; H kept lane-aligned (multiple of 128), batch padded to 16
    # internally (two batch blocks -> exercises the parallel batch grid axis),
    # T=12 with T_blk=8 exercises the time padding path.
    B, T = 10, 12
    NUM_CHR, PAD_IDX = 40, 0
    EMB_DIM = 64
    HIDDEN = 128
    N_LAYERS = 2

    key = jax.random.PRNGKey(0)
    key, k_model, k_chr, k_wlen, k_nsyl = jax.random.split(key, 5)

    model = PTEmbRegPallas(
        num_chr=NUM_CHR, pad_idx=PAD_IDX, emb_dim=EMB_DIM, emb_dropout=0.3,
        lstm_hidden_dim=HIDDEN, lstm_num_layers=N_LAYERS,
        lstm_bidirectional=True, lstm_dropout=0.3, interim_linear_dim=32,
        concat_wlen=True, concat_nsyl=True, key=k_model, t_blk=8, b_blk=8)

    chrs = jax.random.randint(k_chr, (B, T), 0, NUM_CHR, dtype=jnp.int32)
    wlens = jax.random.normal(k_wlen, (B, 1), jnp.float32)
    nsyls = jax.random.normal(k_nsyl, (B, 1), jnp.float32)

    y = model(chrs, wlens, nsyls, training=False)   # eval mode (dropout = identity)
    y = jax.block_until_ready(y)
    assert y.shape == (B, 1)

    y_ref = _reference_forward(model, chrs, wlens, nsyls)
    np.testing.assert_allclose(np.asarray(y), np.asarray(y_ref),
                               rtol=2e-2, atol=2e-2)

    print("KERNEL_OK")
</pallas_src>

<mosaic_0001>
module attributes {stable_mosaic.version = 11 : i64} {
  func.func @_lstm_recurrence_kernel(%arg0: i32, %arg1: i32, %arg2: memref<8x8x512xbf16, #tpu.memory_space<vmem>>, %arg3: memref<128x512xbf16, #tpu.memory_space<any>>, %arg4: memref<8x8x128xf32, #tpu.memory_space<vmem>>, %arg5: memref<8x128xf32, #tpu.memory_space<vmem>>, %arg6: memref<8x128xf32, #tpu.memory_space<vmem>>, %arg7: memref<128x512xbf16, #tpu.memory_space<vmem>>) attributes {dimension_semantics = [#tpu.dimension_semantics<parallel>, #tpu.dimension_semantics<arbitrary>], iteration_bounds = array<i64: 2, 2>, scalar_prefetch = 0 : i64, scratch_operands = 3 : i64, tpu.core_type = #tpu.core_type<tc>, window_params = [{transform_indices = @transform_0, window_bounds = array<i64: 8, 8, 512>}, {}, {transform_indices = @transform_2, window_bounds = array<i64: 8, 8, 128>}]} {
    %c0_i32 = arith.constant 0 : i32
    %0 = arith.cmpi eq, %arg1, %c0_i32 : i32
    %1 = arith.extui %0 : i1 to i32
    %c0_i32_0 = arith.constant 0 : i32
    %2 = arith.cmpi ne, %1, %c0_i32_0 : i32
    scf.if %2 {
      %cst_74 = arith.constant 0.000000e+00 : f32
      %296 = vector.broadcast %cst_74 : f32 to vector<8x128xf32>
      %c0_75 = arith.constant 0 : index
      %c0_76 = arith.constant 0 : index
      %297 = vector.load %arg5[%c0_75, %c0_76] : memref<8x128xf32, #tpu.memory_space<vmem>>, vector<8x128xf32>
      tpu.vector_store %arg5[%c0_75, %c0_76], %296 {strides = array<i32>} : memref<8x128xf32, #tpu.memory_space<vmem>>, vector<8x128xf32>,
      %cst_77 = arith.constant 0.000000e+00 : f32
      %298 = vector.broadcast %cst_77 : f32 to vector<8x128xf32>
      %c0_78 = arith.constant 0 : index
      %c0_79 = arith.constant 0 : index
      %299 = vector.load %arg6[%c0_78, %c0_79] : memref<8x128xf32, #tpu.memory_space<vmem>>, vector<8x128xf32>
      tpu.vector_store %arg6[%c0_78, %c0_79], %298 {strides = array<i32>} : memref<8x128xf32, #tpu.memory_space<vmem>>, vector<8x128xf32>,
      "tpu.region"() ({
        %300 = tpu.sem_alloc : memref<!tpu.dma_semaphore, #tpu.memory_space<semaphore_mem>>
        tpu.enqueue_dma source(%arg3 : memref<128x512xbf16, #tpu.memory_space<any>>) target(%arg7 : memref<128x512xbf16, #tpu.memory_space<vmem>>) target_semaphore(%300 : memref<!tpu.dma_semaphore, #tpu.memory_space<semaphore_mem>>)
        tpu.wait_dma2 semaphore(%300 : memref<!tpu.dma_semaphore, #tpu.memory_space<semaphore_mem>>) src(%arg3 : memref<128x512xbf16, #tpu.memory_space<any>>) dst(%arg7 : memref<128x512xbf16, #tpu.memory_space<vmem>>)
        tpu.yield
      }) : () -> ()
    } else {
    }
    %c0 = arith.constant 0 : index
    %c0_1 = arith.constant 0 : index
    %3 = vector.load %arg7[%c0, %c0_1] : memref<128x512xbf16, #tpu.memory_space<vmem>>, vector<128x512xbf16>
    %c0_2 = arith.constant 0 : index
    %c0_3 = arith.constant 0 : index
    %4 = vector.load %arg5[%c0_2, %c0_3] : memref<8x128xf32, #tpu.memory_space<vmem>>, vector<8x128xf32>
    %c0_4 = arith.constant 0 : index
    %c0_5 = arith.constant 0 : index
    %5 = vector.load %arg6[%c0_4, %c0_5] : memref<8x128xf32, #tpu.memory_space<vmem>>, vector<8x128xf32>
    %c0_i32_6 = arith.constant 0 : i32
    %6 = arith.index_cast %c0_i32_6 : i32 to index
    %c0_7 = arith.constant 0 : index
    %c0_8 = arith.constant 0 : index
    %7 = vector.load %arg2[%6, %c0_7, %c0_8] : memref<8x8x512xbf16, #tpu.memory_space<vmem>>, vector<1x8x512xbf16>
    %8 = vector.shape_cast %7 : vector<1x8x512xbf16> to vector<8x512xbf16>
    %9 = arith.extf %8 : vector<8x512xbf16> to vector<8x512xf32>
    %10 = arith.truncf %4 : vector<8x128xf32> to vector<8x128xbf16>
    %cst = arith.constant dense<0.000000e+00> : vector<8x512xf32>
    %11 = tpu.matmul %10, %3, %cst {dimension_numbers = #tpu.dot_dimension_numbers<[1], [0], [0], [1], [0, 0, 1, 1], [], []>} : vector<8x128xbf16>, vector<128x512xbf16>, vector<8x512xf32> -> vector<8x512xf32>
    %12 = arith.addf %9, %11 : vector<8x512xf32>
    %13 = vector.extract_strided_slice %12 {offsets = [0, 0], sizes = [8, 128], strides = [1, 1]} : vector<8x512xf32> to vector<8x128xf32>
    %14 = arith.negf %13 : vector<8x128xf32>
    %15 = math.exp %14 : vector<8x128xf32>
    %cst_9 = arith.constant 1.000000e+00 : f32
    %16 = vector.broadcast %cst_9 : f32 to vector<8x128xf32>
    %17 = arith.addf %16, %15 : vector<8x128xf32>
    %18 = arith.divf %16, %17 : vector<8x128xf32>
    %19 = vector.extract_strided_slice %12 {offsets = [0, 128], sizes = [8, 128], strides = [1, 1]} : vector<8x512xf32> to vector<8x128xf32>
    %20 = arith.negf %19 : vector<8x128xf32>
    %21 = math.exp %20 : vector<8x128xf32>
    %cst_10 = arith.constant 1.000000e+00 : f32
    %22 = vector.broadcast %cst_10 : f32 to vector<8x128xf32>
    %23 = arith.addf %22, %21 : vector<8x128xf32>
    %24 = arith.divf %22, %23 : vector<8x128xf32>
    %25 = vector.extract_strided_slice %12 {offsets = [0, 256], sizes = [8, 128], strides = [1, 1]} : vector<8x512xf32> to vector<8x128xf32>
    %26 = math.tanh %25 : vector<8x128xf32>
    %27 = vector.extract_strided_slice %12 {offsets = [0, 384], sizes = [8, 128], strides = [1, 1]} : vector<8x512xf32> to vector<8x128xf32>
    %28 = arith.negf %27 : vector<8x128xf32>
    %29 = math.exp %28 : vector<8x128xf32>
    %cst_11 = arith.constant 1.000000e+00 : f32
    %30 = vector.broadcast %cst_11 : f32 to vector<8x128xf32>
    %31 = arith.addf %30, %29 : vector<8x128xf32>
    %32 = arith.divf %30, %31 : vector<8x128xf32>
    %33 = arith.mulf %24, %5 : vector<8x128xf32>
    %34 = arith.mulf %18, %26 : vector<8x128xf32>
    %35 = arith.addf %33, %34 : vector<8x128xf32>
    %36 = math.tanh %35 : vector<8x128xf32>
    %37 = arith.mulf %32, %36 : vector<8x128xf32>
    %38 = arith.index_cast %c0_i32_6 : i32 to index
    %c0_12 = arith.constant 0 : index
    %c0_13 = arith.constant 0 : index
    %39 = vector.load %arg4[%38, %c0_12, %c0_13] : memref<8x8x128xf32, #tpu.memory_space<vmem>>, vector<1x8x128xf32>
    %40 = vector.shape_cast %39 : vector<1x8x128xf32> to vector<8x128xf32>
    %41 = vector.shape_cast %37 : vector<8x128xf32> to vector<1x8x128xf32>
    tpu.vector_store %arg4[%38, %c0_12, %c0_13], %41 {strides = array<i32>} : memref<8x8x128xf32, #tpu.memory_space<vmem>>, vector<1x8x128xf32>,
    %c1_i32 = arith.constant 1 : i32
    %42 = arith.index_cast %c1_i32 : i32 to index
    %c0_14 = arith.constant 0 : index
    %c0_15 = arith.constant 0 : index
    %43 = vector.load %arg2[%42, %c0_14, %c0_15] : memref<8x8x512xbf16, #tpu.memory_space<vmem>>, vector<1x8x512xbf16>
    %44 = vector.shape_cast %43 : vector<1x8x512xbf16> to vector<8x512xbf16>
    %45 = arith.extf %44 : vector<8x512xbf16> to vector<8x512xf32>
    %46 = arith.truncf %37 : vector<8x128xf32> to vector<8x128xbf16>
    %cst_16 = arith.constant dense<0.000000e+00> : vector<8x512xf32>
    %47 = tpu.matmul %46, %3, %cst_16 {dimension_numbers = #tpu.dot_dimension_numbers<[1], [0], [0], [1], [0, 0, 1, 1], [], []>} : vector<8x128xbf16>, vector<128x512xbf16>, vector<8x512xf32> -> vector<8x512xf32>
    %48 = arith.addf %45, %47 : vector<8x512xf32>
    %49 = vector.extract_strided_slice %48 {offsets = [0, 0], sizes = [8, 128], strides = [1, 1]} : vector<8x512xf32> to vector<8x128xf32>
    %50 = arith.negf %49 : vector<8x128xf32>
    %51 = math.exp %50 : vector<8x128xf32>
    %cst_17 = arith.constant 1.000000e+00 : f32
    %52 = vector.broadcast %cst_17 : f32 to vector<8x128xf32>
    %53 = arith.addf %52, %51 : vector<8x128xf32>
    %54 = arith.divf %52, %53 : vector<8x128xf32>
    %55 = vector.extract_strided_slice %48 {offsets = [0, 128], sizes = [8, 128], strides = [1, 1]} : vector<8x512xf32> to vector<8x128xf32>
    %56 = arith.negf %55 : vector<8x128xf32>
    %57 = math.exp %56 : vector<8x128xf32>
    %cst_18 = arith.constant 1.000000e+00 : f32
    %58 = vector.broadcast %cst_18 : f32 to vector<8x128xf32>
    %59 = arith.addf %58, %57 : vector<8x128xf32>
    %60 = arith.divf %58, %59 : vector<8x128xf32>
    %61 = vector.extract_strided_slice %48 {offsets = [0, 256], sizes = [8, 128], strides = [1, 1]} : vector<8x512xf32> to vector<8x128xf32>
    %62 = math.tanh %61 : vector<8x128xf32>
    %63 = vector.extract_strided_slice %48 {offsets = [0, 384], sizes = [8, 128], strides = [1, 1]} : vector<8x512xf32> to vector<8x128xf32>
    %64 = arith.negf %63 : vector<8x128xf32>
    %65 = math.exp %64 : vector<8x128xf32>
    %cst_19 = arith.constant 1.000000e+00 : f32
    %66 = vector.broadcast %cst_19 : f32 to vector<8x128xf32>
    %67 = arith.addf %66, %65 : vector<8x128xf32>
    %68 = arith.divf %66, %67 : vector<8x128xf32>
    %69 = arith.mulf %60, %35 : vector<8x128xf32>
    %70 = arith.mulf %54, %62 : vector<8x128xf32>
    %71 = arith.addf %69, %70 : vector<8x128xf32>
    %72 = math.tanh %71 : vector<8x128xf32>
    %73 = arith.mulf %68, %72 : vector<8x128xf32>
    %74 = arith.index_cast %c1_i32 : i32 to index
    %c0_20 = arith.constant 0 : index
    %c0_21 = arith.constant 0 : index
    %75 = vector.load %arg4[%74, %c0_20, %c0_21] : memref<8x8x128xf32, #tpu.memory_space<vmem>>, vector<1x8x128xf32>
    %76 = vector.shape_cast %75 : vector<1x8x128xf32> to vector<8x128xf32>
    %77 = vector.shape_cast %73 : vector<8x128xf32> to vector<1x8x128xf32>
    tpu.vector_store %arg4[%74, %c0_20, %c0_21], %77 {strides = array<i32>} : memref<8x8x128xf32, #tpu.memory_space<vmem>>, vector<1x8x128xf32>,
    %c2_i32 = arith.constant 2 : i32
    %78 = arith.index_cast %c2_i32 : i32 to index
    %c0_22 = arith.constant 0 : index
    %c0_23 = arith.constant 0 : index
    %79 = vector.load %arg2[%78, %c0_22, %c0_23] : memref<8x8x512xbf16, #tpu.memory_space<vmem>>, vector<1x8x512xbf16>
    %80 = vector.shape_cast %79 : vector<1x8x512xbf16> to vector<8x512xbf16>
    %81 = arith.extf %80 : vector<8x512xbf16> to vector<8x512xf32>
    %82 = arith.truncf %73 : vector<8x128xf32> to vector<8x128xbf16>
    %cst_24 = arith.constant dense<0.000000e+00> : vector<8x512xf32>
    %83 = tpu.matmul %82, %3, %cst_24 {dimension_numbers = #tpu.dot_dimension_numbers<[1], [0], [0], [1], [0, 0, 1, 1], [], []>} : vector<8x128xbf16>, vector<128x512xbf16>, vector<8x512xf32> -> vector<8x512xf32>
    %84 = arith.addf %81, %83 : vector<8x512xf32>
    %85 = vector.extract_strided_slice %84 {offsets = [0, 0], sizes = [8, 128], strides = [1, 1]} : vector<8x512xf32> to vector<8x128xf32>
    %86 = arith.negf %85 : vector<8x128xf32>
    %87 = math.exp %86 : vector<8x128xf32>
    %cst_25 = arith.constant 1.000000e+00 : f32
    %88 = vector.broadcast %cst_25 : f32 to vector<8x128xf32>
    %89 = arith.addf %88, %87 : vector<8x128xf32>
    %90 = arith.divf %88, %89 : vector<8x128xf32>
    %91 = vector.extract_strided_slice %84 {offsets = [0, 128], sizes = [8, 128], strides = [1, 1]} : vector<8x512xf32> to vector<8x128xf32>
    %92 = arith.negf %91 : vector<8x128xf32>
    %93 = math.exp %92 : vector<8x128xf32>
    %cst_26 = arith.constant 1.000000e+00 : f32
    %94 = vector.broadcast %cst_26 : f32 to vector<8x128xf32>
    %95 = arith.addf %94, %93 : vector<8x128xf32>
    %96 = arith.divf %94, %95 : vector<8x128xf32>
    %97 = vector.extract_strided_slice %84 {offsets = [0, 256], sizes = [8, 128], strides = [1, 1]} : vector<8x512xf32> to vector<8x128xf32>
    %98 = math.tanh %97 : vector<8x128xf32>
    %99 = vector.extract_strided_slice %84 {offsets = [0, 384], sizes = [8, 128], strides = [1, 1]} : vector<8x512xf32> to vector<8x128xf32>
    %100 = arith.negf %99 : vector<8x128xf32>
    %101 = math.exp %100 : vector<8x128xf32>
    %cst_27 = arith.constant 1.000000e+00 : f32
    %102 = vector.broadcast %cst_27 : f32 to vector<8x128xf32>
    %103 = arith.addf %102, %101 : vector<8x128xf32>
    %104 = arith.divf %102, %103 : vector<8x128xf32>
    %105 = arith.mulf %96, %71 : vector<8x128xf32>
    %106 = arith.mulf %90, %98 : vector<8x128xf32>
    %107 = arith.addf %105, %106 : vector<8x128xf32>
    %108 = math.tanh %107 : vector<8x128xf32>
    %109 = arith.mulf %104, %108 : vector<8x128xf32>
    %110 = arith.index_cast %c2_i32 : i32 to index
    %c0_28 = arith.constant 0 : index
    %c0_29 = arith.constant 0 : index
    %111 = vector.load %arg4[%110, %c0_28, %c0_29] : memref<8x8x128xf32, #tpu.memory_space<vmem>>, vector<1x8x128xf32>
    %112 = vector.shape_cast %111 : vector<1x8x128xf32> to vector<8x128xf32>
    %113 = vector.shape_cast %109 : vector<8x128xf32> to vector<1x8x128xf32>
    tpu.vector_store %arg4[%110, %c0_28, %c0_29], %113 {strides = array<i32>} : memref<8x8x128xf32, #tpu.memory_space<vmem>>, vector<1x8x128xf32>,
    %c3_i32 = arith.constant 3 : i32
    %114 = arith.index_cast %c3_i32 : i32 to index
    %c0_30 = arith.constant 0 : index
    %c0_31 = arith.constant 0 : index
    %115 = vector.load %arg2[%114, %c0_30, %c0_31] : memref<8x8x512xbf16, #tpu.memory_space<vmem>>, vector<1x8x512xbf16>
    %116 = vector.shape_cast %115 : vector<1x8x512xbf16> to vector<8x512xbf16>
    %117 = arith.extf %116 : vector<8x512xbf16> to vector<8x512xf32>
    %118 = arith.truncf %109 : vector<8x128xf32> to vector<8x128xbf16>
    %cst_32 = arith.constant dense<0.000000e+00> : vector<8x512xf32>
    %119 = tpu.matmul %118, %3, %cst_32 {dimension_numbers = #tpu.dot_dimension_numbers<[1], [0], [0], [1], [0, 0, 1, 1], [], []>} : vector<8x128xbf16>, vector<128x512xbf16>, vector<8x512xf32> -> vector<8x512xf32>
    %120 = arith.addf %117, %119 : vector<8x512xf32>
    %121 = vector.extract_strided_slice %120 {offsets = [0, 0], sizes = [8, 128], strides = [1, 1]} : vector<8x512xf32> to vector<8x128xf32>
    %122 = arith.negf %121 : vector<8x128xf32>
    %123 = math.exp %122 : vector<8x128xf32>
    %cst_33 = arith.constant 1.000000e+00 : f32
    %124 = vector.broadcast %cst_33 : f32 to vector<8x128xf32>
    %125 = arith.addf %124, %123 : vector<8x128xf32>
    %126 = arith.divf %124, %125 : vector<8x128xf32>
    %127 = vector.extract_strided_slice %120 {offsets = [0, 128], sizes = [8, 128], strides = [1, 1]} : vector<8x512xf32> to vector<8x128xf32>
    %128 = arith.negf %127 : vector<8x128xf32>
    %129 = math.exp %128 : vector<8x128xf32>
    %cst_34 = arith.constant 1.000000e+00 : f32
    %130 = vector.broadcast %cst_34 : f32 to vector<8x128xf32>
    %131 = arith.addf %130, %129 : vector<8x128xf32>
    %132 = arith.divf %130, %131 : vector<8x128xf32>
    %133 = vector.extract_strided_slice %120 {offsets = [0, 256], sizes = [8, 128], strides = [1, 1]} : vector<8x512xf32> to vector<8x128xf32>
    %134 = math.tanh %133 : vector<8x128xf32>
    %135 = vector.extract_strided_slice %120 {offsets = [0, 384], sizes = [8, 128], strides = [1, 1]} : vector<8x512xf32> to vector<8x128xf32>
    %136 = arith.negf %135 : vector<8x128xf32>
    %137 = math.exp %136 : vector<8x128xf32>
    %cst_35 = arith.constant 1.000000e+00 : f32
    %138 = vector.broadcast %cst_35 : f32 to vector<8x128xf32>
    %139 = arith.addf %138, %137 : vector<8x128xf32>
    %140 = arith.divf %138, %139 : vector<8x128xf32>
    %141 = arith.mulf %132, %107 : vector<8x128xf32>
    %142 = arith.mulf %126, %134 : vector<8x128xf32>
    %143 = arith.addf %141, %142 : vector<8x128xf32>
    %144 = math.tanh %143 : vector<8x128xf32>
    %145 = arith.mulf %140, %144 : vector<8x128xf32>
    %146 = arith.index_cast %c3_i32 : i32 to index
    %c0_36 = arith.constant 0 : index
    %c0_37 = arith.constant 0 : index
    %147 = vector.load %arg4[%146, %c0_36, %c0_37] : memref<8x8x128xf32, #tpu.memory_space<vmem>>, vector<1x8x128xf32>
    %148 = vector.shape_cast %147 : vector<1x8x128xf32> to vector<8x128xf32>
    %149 = vector.shape_cast %145 : vector<8x128xf32> to vector<1x8x128xf32>
    tpu.vector_store %arg4[%146, %c0_36, %c0_37], %149 {strides = array<i32>} : memref<8x8x128xf32, #tpu.memory_space<vmem>>, vector<1x8x128xf32>,
    %c4_i32 = arith.constant 4 : i32
    %150 = arith.index_cast %c4_i32 : i32 to index
    %c0_38 = arith.constant 0 : index
    %c0_39 = arith.constant 0 : index
    %151 = vector.load %arg2[%150, %c0_38, %c0_39] : memref<8x8x512xbf16, #tpu.memory_space<vmem>>, vector<1x8x512xbf16>
    %152 = vector.shape_cast %151 : vector<1x8x512xbf16> to vector<8x512xbf16>
    %153 = arith.extf %152 : vector<8x512xbf16> to vector<8x512xf32>
    %154 = arith.truncf %145 : vector<8x128xf32> to vector<8x128xbf16>
    %cst_40 = arith.constant dense<0.000000e+00> : vector<8x512xf32>
    %155 = tpu.matmul %154, %3, %cst_40 {dimension_numbers = #tpu.dot_dimension_numbers<[1], [0], [0], [1], [0, 0, 1, 1], [], []>} : vector<8x128xbf16>, vector<128x512xbf16>, vector<8x512xf32> -> vector<8x512xf32>
    %156 = arith.addf %153, %155 : vector<8x512xf32>
    %157 = vector.extract_strided_slice %156 {offsets = [0, 0], sizes = [8, 128], strides = [1, 1]} : vector<8x512xf32> to vector<8x128xf32>
    %158 = arith.negf %157 : vector<8x128xf32>
    %159 = math.exp %158 : vector<8x128xf32>
    %cst_41 = arith.constant 1.000000e+00 : f32
    %160 = vector.broadcast %cst_41 : f32 to vector<8x128xf32>
    %161 = arith.addf %160, %159 : vector<8x128xf32>
    %162 = arith.divf %160, %161 : vector<8x128xf32>
    %163 = vector.extract_strided_slice %156 {offsets = [0, 128], sizes = [8, 128], strides = [1, 1]} : vector<8x512xf32> to vector<8x128xf32>
    %164 = arith.negf %163 : vector<8x128xf32>
    %165 = math.exp %164 : vector<8x128xf32>
    %cst_42 = arith.constant 1.000000e+00 : f32
    %166 = vector.broadcast %cst_42 : f32 to vector<8x128xf32>
    %167 = arith.addf %166, %165 : vector<8x128xf32>
    %168 = arith.divf %166, %167 : vector<8x128xf32>
    %169 = vector.extract_strided_slice %156 {offsets = [0, 256], sizes = [8, 128], strides = [1, 1]} : vector<8x512xf32> to vector<8x128xf32>
    %170 = math.tanh %169 : vector<8x128xf32>
    %171 = vector.extract_strided_slice %156 {offsets = [0, 384], sizes = [8, 128], strides = [1, 1]} : vector<8x512xf32> to vector<8x128xf32>
    %172 = arith.negf %171 : vector<8x128xf32>
    %173 = math.exp %172 : vector<8x128xf32>
    %cst_43 = arith.constant 1.000000e+00 : f32
    %174 = vector.broadcast %cst_43 : f32 to vector<8x128xf32>
    %175 = arith.addf %174, %173 : vector<8x128xf32>
    %176 = arith.divf %174, %175 : vector<8x128xf32>
    %177 = arith.mulf %168, %143 : vector<8x128xf32>
    %178 = arith.mulf %162, %170 : vector<8x128xf32>
    %179 = arith.addf %177, %178 : vector<8x128xf32>
    %180 = math.tanh %179 : vector<8x128xf32>
    %181 = arith.mulf %176, %180 : vector<8x128xf32>
    %182 = arith.index_cast %c4_i32 : i32 to index
    %c0_44 = arith.constant 0 : index
    %c0_45 = arith.constant 0 : index
    %183 = vector.load %arg4[%182, %c0_44, %c0_45] : memref<8x8x128xf32, #tpu.memory_space<vmem>>, vector<1x8x128xf32>
    %184 = vector.shape_cast %183 : vector<1x8x128xf32> to vector<8x128xf32>
    %185 = vector.shape_cast %181 : vector<8x128xf32> to vector<1x8x128xf32>
    tpu.vector_store %arg4[%182, %c0_44, %c0_45], %185 {strides = array<i32>} : memref<8x8x128xf32, #tpu.memory_space<vmem>>, vector<1x8x128xf32>,
    %c5_i32 = arith.constant 5 : i32
    %186 = arith.index_cast %c5_i32 : i32 to index
    %c0_46 = arith.constant 0 : index
    %c0_47 = arith.constant 0 : index
    %187 = vector.load %arg2[%186, %c0_46, %c0_47] : memref<8x8x512xbf16, #tpu.memory_space<vmem>>, vector<1x8x512xbf16>
    %188 = vector.shape_cast %187 : vector<1x8x512xbf16> to vector<8x512xbf16>
    %189 = arith.extf %188 : vector<8x512xbf16> to vector<8x512xf32>
    %190 = arith.truncf %181 : vector<8x128xf32> to vector<8x128xbf16>
    %cst_48 = arith.constant dense<0.000000e+00> : vector<8x512xf32>
    %191 = tpu.matmul %190, %3, %cst_48 {dimension_numbers = #tpu.dot_dimension_numbers<[1], [0], [0], [1], [0, 0, 1, 1], [], []>} : vector<8x128xbf16>, vector<128x512xbf16>, vector<8x512xf32> -> vector<8x512xf32>
    %192 = arith.addf %189, %191 : vector<8x512xf32>
    %193 = vector.extract_strided_slice %192 {offsets = [0, 0], sizes = [8, 128], strides = [1, 1]} : vector<8x512xf32> to vector<8x128xf32>
    %194 = arith.negf %193 : vector<8x128xf32>
    %195 = math.exp %194 : vector<8x128xf32>
    %cst_49 = arith.constant 1.000000e+00 : f32
    %196 = vector.broadcast %cst_49 : f32 to vector<8x128xf32>
    %197 = arith.addf %196, %195 : vector<8x128xf32>
    %198 = arith.divf %196, %197 : vector<8x128xf32>
    %199 = vector.extract_strided_slice %192 {offsets = [0, 128], sizes = [8, 128], strides = [1, 1]} : vector<8x512xf32> to vector<8x128xf32>
    %200 = arith.negf %199 : vector<8x128xf32>
    %201 = math.exp %200 : vector<8x128xf32>
    %cst_50 = arith.constant 1.000000e+00 : f32
    %202 = vector.broadcast %cst_50 : f32 to vector<8x128xf32>
    %203 = arith.addf %202, %201 : vector<8x128xf32>
    %204 = arith.divf %202, %203 : vector<8x128xf32>
    %205 = vector.extract_strided_slice %192 {offsets = [0, 256], sizes = [8, 128], strides = [1, 1]} : vector<8x512xf32> to vector<8x128xf32>
    %206 = math.tanh %205 : vector<8x128xf32>
    %207 = vector.extract_strided_slice %192 {offsets = [0, 384], sizes = [8, 128], strides = [1, 1]} : vector<8x512xf32> to vector<8x128xf32>
    %208 = arith.negf %207 : vector<8x128xf32>
    %209 = math.exp %208 : vector<8x128xf32>
    %cst_51 = arith.constant 1.000000e+00 : f32
    %210 = vector.broadcast %cst_51 : f32 to vector<8x128xf32>
    %211 = arith.addf %210, %209 : vector<8x128xf32>
    %212 = arith.divf %210, %211 : vector<8x128xf32>
    %213 = arith.mulf %204, %179 : vector<8x128xf32>
    %214 = arith.mulf %198, %206 : vector<8x128xf32>
    %215 = arith.addf %213, %214 : vector<8x128xf32>
    %216 = math.tanh %215 : vector<8x128xf32>
    %217 = arith.mulf %212, %216 : vector<8x128xf32>
    %218 = arith.index_cast %c5_i32 : i32 to index
    %c0_52 = arith.constant 0 : index
    %c0_53 = arith.constant 0 : index
    %219 = vector.load %arg4[%218, %c0_52, %c0_53] : memref<8x8x128xf32, #tpu.memory_space<vmem>>, vector<1x8x128xf32>
    %220 = vector.shape_cast %219 : vector<1x8x128xf32> to vector<8x128xf32>
    %221 = vector.shape_cast %217 : vector<8x128xf32> to vector<1x8x128xf32>
    tpu.vector_store %arg4[%218, %c0_52, %c0_53], %221 {strides = array<i32>} : memref<8x8x128xf32, #tpu.memory_space<vmem>>, vector<1x8x128xf32>,
    %c6_i32 = arith.constant 6 : i32
    %222 = arith.index_cast %c6_i32 : i32 to index
    %c0_54 = arith.constant 0 : index
    %c0_55 = arith.constant 0 : index
    %223 = vector.load %arg2[%222, %c0_54, %c0_55] : memref<8x8x512xbf16, #tpu.memory_space<vmem>>, vector<1x8x512xbf16>
    %224 = vector.shape_cast %223 : vector<1x8x512xbf16> to vector<8x512xbf16>
    %225 = arith.extf %224 : vector<8x512xbf16> to vector<8x512xf32>
    %226 = arith.truncf %217 : vector<8x128xf32> to vector<8x128xbf16>
    %cst_56 = arith.constant dense<0.000000e+00> : vector<8x512xf32>
    %227 = tpu.matmul %226, %3, %cst_56 {dimension_numbers = #tpu.dot_dimension_numbers<[1], [0], [0], [1], [0, 0, 1, 1], [], []>} : vector<8x128xbf16>, vector<128x512xbf16>, vector<8x512xf32> -> vector<8x512xf32>
    %228 = arith.addf %225, %227 : vector<8x512xf32>
    %229 = vector.extract_strided_slice %228 {offsets = [0, 0], sizes = [8, 128], strides = [1, 1]} : vector<8x512xf32> to vector<8x128xf32>
    %230 = arith.negf %229 : vector<8x128xf32>
    %231 = math.exp %230 : vector<8x128xf32>
    %cst_57 = arith.constant 1.000000e+00 : f32
    %232 = vector.broadcast %cst_57 : f32 to vector<8x128xf32>
    %233 = arith.addf %232, %231 : vector<8x128xf32>
    %234 = arith.divf %232, %233 : vector<8x128xf32>
    %235 = vector.extract_strided_slice %228 {offsets = [0, 128], sizes = [8, 128], strides = [1, 1]} : vector<8x512xf32> to vector<8x128xf32>
    %236 = arith.negf %235 : vector<8x128xf32>
    %237 = math.exp %236 : vector<8x128xf32>
    %cst_58 = arith.constant 1.000000e+00 : f32
    %238 = vector.broadcast %cst_58 : f32 to vector<8x128xf32>
    %239 = arith.addf %238, %237 : vector<8x128xf32>
    %240 = arith.divf %238, %239 : vector<8x128xf32>
    %241 = vector.extract_strided_slice %228 {offsets = [0, 256], sizes = [8, 128], strides = [1, 1]} : vector<8x512xf32> to vector<8x128xf32>
    %242 = math.tanh %241 : vector<8x128xf32>
    %243 = vector.extract_strided_slice %228 {offsets = [0, 384], sizes = [8, 128], strides = [1, 1]} : vector<8x512xf32> to vector<8x128xf32>
    %244 = arith.negf %243 : vector<8x128xf32>
    %245 = math.exp %244 : vector<8x128xf32>
    %cst_59 = arith.constant 1.000000e+00 : f32
    %246 = vector.broadcast %cst_59 : f32 to vector<8x128xf32>
    %247 = arith.addf %246, %245 : vector<8x128xf32>
    %248 = arith.divf %246, %247 : vector<8x128xf32>
    %249 = arith.mulf %240, %215 : vector<8x128xf32>
    %250 = arith.mulf %234, %242 : vector<8x128xf32>
    %251 = arith.addf %249, %250 : vector<8x128xf32>
    %252 = math.tanh %251 : vector<8x128xf32>
    %253 = arith.mulf %248, %252 : vector<8x128xf32>
    %254 = arith.index_cast %c6_i32 : i32 to index
    %c0_60 = arith.constant 0 : index
    %c0_61 = arith.constant 0 : index
    %255 = vector.load %arg4[%254, %c0_60, %c0_61] : memref<8x8x128xf32, #tpu.memory_space<vmem>>, vector<1x8x128xf32>
    %256 = vector.shape_cast %255 : vector<1x8x128xf32> to vector<8x128xf32>
    %257 = vector.shape_cast %253 : vector<8x128xf32> to vector<1x8x128xf32>
    tpu.vector_store %arg4[%254, %c0_60, %c0_61], %257 {strides = array<i32>} : memref<8x8x128xf32, #tpu.memory_space<vmem>>, vector<1x8x128xf32>,
    %c7_i32 = arith.constant 7 : i32
    %258 = arith.index_cast %c7_i32 : i32 to index
    %c0_62 = arith.constant 0 : index
    %c0_63 = arith.constant 0 : index
    %259 = vector.load %arg2[%258, %c0_62, %c0_63] : memref<8x8x512xbf16, #tpu.memory_space<vmem>>, vector<1x8x512xbf16>
    %260 = vector.shape_cast %259 : vector<1x8x512xbf16> to vector<8x512xbf16>
    %261 = arith.extf %260 : vector<8x512xbf16> to vector<8x512xf32>
    %262 = arith.truncf %253 : vector<8x128xf32> to vector<8x128xbf16>
    %cst_64 = arith.constant dense<0.000000e+00> : vector<8x512xf32>
    %263 = tpu.matmul %262, %3, %cst_64 {dimension_numbers = #tpu.dot_dimension_numbers<[1], [0], [0], [1], [0, 0, 1, 1], [], []>} : vector<8x128xbf16>, vector<128x512xbf16>, vector<8x512xf32> -> vector<8x512xf32>
    %264 = arith.addf %261, %263 : vector<8x512xf32>
    %265 = vector.extract_strided_slice %264 {offsets = [0, 0], sizes = [8, 128], strides = [1, 1]} : vector<8x512xf32> to vector<8x128xf32>
    %266 = arith.negf %265 : vector<8x128xf32>
    %267 = math.exp %266 : vector<8x128xf32>
    %cst_65 = arith.constant 1.000000e+00 : f32
    %268 = vector.broadcast %cst_65 : f32 to vector<8x128xf32>
    %269 = arith.addf %268, %267 : vector<8x128xf32>
    %270 = arith.divf %268, %269 : vector<8x128xf32>
    %271 = vector.extract_strided_slice %264 {offsets = [0, 128], sizes = [8, 128], strides = [1, 1]} : vector<8x512xf32> to vector<8x128xf32>
    %272 = arith.negf %271 : vector<8x128xf32>
    %273 = math.exp %272 : vector<8x128xf32>
    %cst_66 = arith.constant 1.000000e+00 : f32
    %274 = vector.broadcast %cst_66 : f32 to vector<8x128xf32>
    %275 = arith.addf %274, %273 : vector<8x128xf32>
    %276 = arith.divf %274, %275 : vector<8x128xf32>
    %277 = vector.extract_strided_slice %264 {offsets = [0, 256], sizes = [8, 128], strides = [1, 1]} : vector<8x512xf32> to vector<8x128xf32>
    %278 = math.tanh %277 : vector<8x128xf32>
    %279 = vector.extract_strided_slice %264 {offsets = [0, 384], sizes = [8, 128], strides = [1, 1]} : vector<8x512xf32> to vector<8x128xf32>
    %280 = arith.negf %279 : vector<8x128xf32>
    %281 = math.exp %280 : vector<8x128xf32>
    %cst_67 = arith.constant 1.000000e+00 : f32
    %282 = vector.broadcast %cst_67 : f32 to vector<8x128xf32>
    %283 = arith.addf %282, %281 : vector<8x128xf32>
    %284 = arith.divf %282, %283 : vector<8x128xf32>
    %285 = arith.mulf %276, %251 : vector<8x128xf32>
    %286 = arith.mulf %270, %278 : vector<8x128xf32>
    %287 = arith.addf %285, %286 : vector<8x128xf32>
    %288 = math.tanh %287 : vector<8x128xf32>
    %289 = arith.mulf %284, %288 : vector<8x128xf32>
    %290 = arith.index_cast %c7_i32 : i32 to index
    %c0_68 = arith.constant 0 : index
    %c0_69 = arith.constant 0 : index
    %291 = vector.load %arg4[%290, %c0_68, %c0_69] : memref<8x8x128xf32, #tpu.memory_space<vmem>>, vector<1x8x128xf32>
    %292 = vector.shape_cast %291 : vector<1x8x128xf32> to vector<8x128xf32>
    %293 = vector.shape_cast %289 : vector<8x128xf32> to vector<1x8x128xf32>
    tpu.vector_store %arg4[%290, %c0_68, %c0_69], %293 {strides = array<i32>} : memref<8x8x128xf32, #tpu.memory_space<vmem>>, vector<1x8x128xf32>,
    %c8_i32 = arith.constant 8 : i32
    %c0_70 = arith.constant 0 : index
    %c0_71 = arith.constant 0 : index
    %294 = vector.load %arg5[%c0_70, %c0_71] : memref<8x128xf32, #tpu.memory_space<vmem>>, vector<8x128xf32>
    tpu.vector_store %arg5[%c0_70, %c0_71], %289 {strides = array<i32>} : memref<8x128xf32, #tpu.memory_space<vmem>>, vector<8x128xf32>,
    %c0_72 = arith.constant 0 : index
    %c0_73 = arith.constant 0 : index
    %295 = vector.load %arg6[%c0_72, %c0_73] : memref<8x128xf32, #tpu.memory_space<vmem>>, vector<8x128xf32>
    tpu.vector_store %arg6[%c0_72, %c0_73], %287 {strides = array<i32>} : memref<8x128xf32, #tpu.memory_space<vmem>>, vector<8x128xf32>,
    return
  }
  func.func @transform_0(%arg0: i32, %arg1: i32) -> (i32, i32, i32) {
    %c0_i32 = arith.constant 0 : i32
    %c0_i32_0 = arith.constant 0 : i32
    return %arg1, %arg0, %c0_i32 : i32, i32, i32
  }
  func.func @transform_2(%arg0: i32, %arg1: i32) -> (i32, i32, i32) {
    %c0_i32 = arith.constant 0 : i32
    %c0_i32_0 = arith.constant 0 : i32
    return %arg1, %arg0, %c0_i32 : i32, i32, i32
  }
}

</mosaic_0001>

<bundles_post_ra>
// kernel: tpu_custom_call.1
= control target key start
LH: loop header
LB: loop body
LE: loop exit
PB: predicated region body
PF: predicated region fallthrough
CT: control target
= control target key end

     0   :  { %s2350_s0 = inlined_call_operand.hbm [shape: bf16[16,16,512], index: 0, kind: input, shape index: {}]   ;;  %s2351_s1 = inlined_call_operand.hbm [shape: bf16[128,512], index: 1, kind: input, shape index: {}]   ;;  %s2352_s2 = inlined_call_operand.hbm [shape: f32[16,16,128], index: 2, kind: output, shape index: {}]  }
   0x1   :  { %2355 = sst [smem:[#allocation16_spill]] %s2350_s0 }
   0x2   :  { %7 = vsyncpa [#allocation6], 0 }
   0x3   :  { %9 = vsyncpa [#allocation6 + $0x1], 0 }
   0x4   :  { %10 = vsyncpa [#allocation7], 0 }
   0x5   :  { %12 = vsyncpa [#allocation7 + $0x1], 0  ;;  %s1790_s9 = smov 0   ;;  %s1792_s10 = smov 0  }
   0x6   :  { %s1794_s11 = smov 0   ;;  %s1796_s12 = smov 0  }
   0x7   :  { %s1798_s13 = smov 0   ;;  %s1800_s14 = smov 0  }
   0x8   :  { %s1802_s15 = smov 0   ;;  %s1804_s16 = smov 0  }
   0x9 LB: > { %s1302_s17 = sadd.s32 4294967295, %s1754_s16   ;;  %s1303_s18 = sadd.s32 4294967294, %s1754_s16   ;;  %s1754_s16 = sphi %s1804_s16, %s18_s16   ;;  %s1750_s15 = sphi %s1802_s15, %s2373_s15   ;;  %s1746_s14 = sphi %s1800_s14, %s2372_s14   ;;  %s1742_s13 = sphi %s1798_s13, %s2371_s13   ;;  %s1738_s12 = sphi %s1796_s12, %s2370_s12   ;;  %s1734_s11 = sphi %s1794_s11, %s2369_s11   ;;  %s1730_s10 = sphi %s1792_s10, %s2368_s10   ;;  %s1726_s9 = sphi %s1790_s9, %s2367_s9  }
   0xa   : > { %s27_s19 = sadd.s32 1, %s1746_s14  ;;  %s30_s20 = sadd.s32 1, %s1750_s15 }
   0xb   : > { %p28_p0 = scmp.ge.s32.totalorder %s27_s19, 2  ;;  %s39_s21 = sadd.s32 1, %s1734_s11 }
   0xc   : > { %p46_p1 = scmp.ne.s32.totalorder %s1734_s11, %s1730_s10  ;;  %p47_p2 = scmp.eq.s32.totalorder %s1754_s16, 0 }
   0xd   : > { %s2375_s19 = smov (%p28_p0, %s27_s19), 0  ;;  %s2377_s20 = smov (!%p28_p0, %s30_s20), %s1750_s15 }
   0xe   : > { %s34_s22 = ssub.s32 %s1746_s14, %s2375_s19  ;;  %p1843_p3 = por %p47_p2, %p46_p1 }
   0xf   : > { %p32_p4 = scmp.ge.s32.totalorder %s2377_s20, 2  ;;  %p52_p5 = scmp.ne.s32.totalorder %s1730_s10, %s1726_s9 }
  0x10   : > { %p53_p6 = scmp.eq.s32.totalorder %s1302_s17, 0  ;;  %p78_p7 = scmp.eq.s32.totalorder %s1302_s17, 3 }
  0x11   : > { %s2379_s20 = smov (%p32_p4, %s2377_s20), 0  ;;  %p84_p10 = scmp.eq.s32.totalorder %s1303_s18, 3 }
  0x12   : > { %2357 = sst [smem:[#allocation15_spill]] %s2379_s20  ;;  %p1851_p8 = por %p53_p6, %p52_p5 }
  0x13   : > { %p1855_p9 = por %p78_p7, %p46_p1  ;;  %s35_s26 = ssub.s32 %s1750_s15, %s2379_s20 }
  0x14   : > { %s36_s27 = sor.u32 %s35_s26, %s34_s22  ;;  %p1861_p12 = por %p84_p10, %p52_p5 }
  0x15   : > { %s2359_s25 = scalar_select %p1855_p9, 1, 0 }
  0x16   : > { %p37_p11 = scmp.eq.s32.totalorder %s36_s27, 0  ;;  %p1382_p13 = scmp.lt.s32.totalorder %s1754_s16, 4 }
  0x17   : > { %s2360_s28 = scalar_select %p1861_p12, 1, 0 }
  0x18   : > { %s104_s29 = sand.u32 1, %s1734_s11   ;;  %s1308_s4 = sshll.u32 %s1750_s15, 2 }
  0x19   : > { %s1868_s30 = scalar_select %p37_p11, %s1734_s11, %s39_s21  }
  0x1a   : > { %s1306_s3 = sshll.u32 %s104_s29, 7  ;;  %s1368_s5 = sshll.u32 %s1746_s14, 6 }
  0x1b   : > { %s108_s6 = scalar_lea.vmem [#allocation5], %s1306_s3  ;;  %s115_s8 = sadd.s32 %s1368_s5, %s1308_s4 }
  0x1c   : > { %s118_s7 = sshll.u32 %s108_s6, 4  ;;  %s1310_s17 = sshll.u32 %s115_s8, 6  ;;  %s1872_s7 = int_to_ptr.vmem [resolvable:$true] %s118_s7 }
  0x1d   : > { %p1876_p0 = pnand %p1382_p13, %p1843_p3  ;;  %s2362_s0 = sld [smem:[#allocation16_spill]] }
  0x1e   : > { %s1886_s27 = scalar_lea.sflag [#allocation6], %s104_s29 }
  0x1f   : > { %p1626_p3 = pneg %p1876_p0 }
  0x23   : > { %s1883_s21 = scalar_lea.hbm %s2362_s0, %s1310_s17  ;;  %s1629_s5 = scalar_lea.hbm %s2362_s0, 8192 }
  0x24   : > { %s1624_s3 = scalar_lea.hbm %s1883_s21, 2048  ;;  %p1630_p6 = scmp.lt.u32.totalorder %s1883_s21, %s2362_s0 }
  0x25   : > { %p1625_p2 = scmp.ne.s32.totalorder %s1883_s21, %s1624_s3  ;;  %p1631_p7 = scmp.lt.u32.totalorder %s1629_s5, %s1624_s3 }
  0x26   : > { %p1633_p11 = scmp.lt.u32.totalorder %s1624_s3, %s1883_s21 }
  0x27   : > { %p1627_p4 = pnand %p1626_p3, %p1625_p2  ;;  %p1632_p10 = por %p1631_p7, %p1630_p6 }
  0x29   : > { %p1628_p5 = pneg %p1627_p4  ;;  %p1634_p13 = por %p1633_p11, %p1632_p10 }
  0x2b   : > { %p1635_p1 = pnand %p1634_p13, %p1628_p5 }
  0x2d   : > { %1638 = shalt.err (!%p1635_p1)
}
  0x2e   : > { %s1639_s29 = scalar_lea.vmem %s1872_s7, 2048  ;;  %s1756_s17 = smov [#allocation5]  }
  0x2f   : > { %p1640_p2 = scmp.ne.s32.totalorder %s1872_s7, %s1639_s29  ;;  %s1644_s22 = sshll.u32 %s1756_s17, 4  ;;  %s1645_s22 = int_to_ptr.vmem [resolvable:$false] %s1644_s22 }
  0x30   : > { %s1646_s26 = scalar_lea.vmem %s1645_s22, 4096  ;;  %p1647_p9 = scmp.lt.s32.totalorder %s1872_s7, %s1645_s22 }
  0x31   : > { %p1642_p4 = pnand %p1640_p2, %p1626_p3  ;;  %p1648_p6 = scmp.lt.s32.totalorder %s1646_s26, %s1639_s29 }
  0x33   : > { %p1643_p12 = pneg %p1642_p4  ;;  %p1649_p7 = por %p1648_p6, %p1647_p9 }
  0x35   : > { %p1650_p10 = pnand %p1649_p7, %p1643_p12 }
  0x37   : > { %1653 = shalt.err (!%p1650_p10)
}
  0x38   : > { %s1757_s3 = smov 512   ;;  %s1758_s23 = smov 256  }
  0x39   : > { %s1759_s4 = smov 16   ;;  %p126_p1 = scmp.lt.s32.totalorder %s1754_s16, 5 }
  0x3a   : > { %1377 = dma.hbm_to_vmem [thread:$0]  (!%p1876_p0), %s1883_s21, 2048, %s1872_s7, %s1886_s27, %s1757_s3, %s1758_s23, %s1759_s4  }
  0x3b   : > { %p2363_p3 = scmp.ge.s32.totalorder %s1754_s16, 1 }
  0x3d   : > { %p127_p5 = pnand %p2363_p3, %p126_p1 }
  0x3e   : > { %s1918_s5 = sand.u32 (!%p127_p5), 1, %s1730_s10  }
  0x3f   : > { %130 = sbr.rel (%p127_p5) target bundleno = 2221 (0x8ad), region = 24  ;;  %s1312_s6 = sshll.u32 (!%p127_p5), %s1918_s5, 7 }
  0x40   : > { %s133_s8 = scalar_lea.sflag (!%p127_p5), [#allocation6], %s1918_s5  ;;  %s1922_s29 = scalar_lea.vmem (!%p127_p5), [#allocation5], %s1312_s6 }
  0x46   : > { %1715 = dma.done.wait (%p1851_p8), %s133_s8, 2048  }
  0x47   : > { %1717 = vsyncadd (%p1851_p8), %s133_s8, 4294965248  ;;  %s1313_s7 = sshll.u32 %s1918_s5, 6  ;;  %p1314_p9 = scmp.ne.s32.totalorder %s1738_s12, 0 }
  0x48   : > { %s1929_s18 = scalar_lea.vmem [#allocation8], %s1313_s7  ;;  %v1760_v0 = vmov (!%p1314_p9), 0.0  }
  0x49   : > { %161 = sbr.rel (%p1314_p9) target bundleno = 94 (0x5e), region = 32  ;;  %162 = vst [vmem:[#allocation2] sm:$0xff] (!%p1314_p9), %v1760_v0  ;;  %163 = vst [vmem:[#allocation3] sm:$0xff] (!%p1314_p9), %v1760_v0 }
  0x50   : > { %s168_s21 = sld [smem:[#allocation0]]   ;;  %s1761_s27 = smov [#allocation4]  }
  0x51   : > { %s176_s17 = sshll.u32 %s1761_s27, 4  ;;  %s1762_s22 = smov 512   ;;  %s177_s17 = int_to_ptr.vmem [resolvable:$true] %s176_s17 }
  0x52   : > { %180 = sst [smem:[#allocation11]] %s1762_s22  ;;  %s1763_s26 = smov 4  }
  0x53   : > { %182 = sst [smem:[#allocation11 + $0x1]] %s1762_s22  ;;  %s1764_s24 = smov 64  }
  0x54   : > { %184 = sst [smem:[#allocation11 + $0x2]] %s1763_s26  ;;  %s1765_s23 = smov 128  }
  0x55   : > { %186 = sst [smem:[#allocation11 + $0x3]] %s1764_s24  ;;  %s1766_s6 = smov 2  }
  0x56   : > { %s1315_s3 = sshll.u32 %s168_s21, 26  ;;  %188 = sst [smem:[#allocation11 + $0x4]] %s1765_s23 }
  0x57   : > { %s1316_s4 = sadd.s32 134217728, %s1315_s3  ;;  %190 = sst [smem:[#allocation11 + $0x5]] %s1766_s6 }
  0x58   : > { %s1767_s8 = smov 256   ;;  %194 = sst [smem:[#allocation11 + $0x7]] %s1764_s24 }
  0x59   : > { %192 = sst [smem:[#allocation11 + $0x6]] %s1767_s8  ;;  %s1768_s7 = smov [#allocation9]  }
  0x5a   : > { %196 = sst [smem:[#allocation11 + $0x8]] %s1763_s26  ;;  %s1769_s27 = smov [#allocation10]  }
  0x5b   : > { %198 = dma.general %s2351_s1, 4096, %s177_s17, %s1768_s7, %s1769_s27, [#allocation11], %s1316_s4, 0  }
  0x5c   : > { %1718 = dma.done.wait [#allocation9], 4096 }
  0x5d   : > { %1719 = vsyncadd [#allocation9], 4294963200 }
  0x5e PF: > { %v1935_v1 = vld [vmem:[#allocation4 + $0x8] sm:$0xff]  ;;  %v1937_v2 = vld [vmem:[#allocation4] sm:$0xff]  ;;  %v1770_v4 = vmov 0   ;;  %v1944_v5 = vld [vmem:[#allocation4 + $0x18] sm:$0xff]  ;;  %s1369_s0 = sshll.u32 %s1738_s12, 4  ;;  %s1213_s21 = sshll.u32 %s1929_s18, 4  ;;  %s2295_s21 = int_to_ptr.vmem [resolvable:$true] %s1213_s21 }
  0x5f   : > { %v1939_v3 = vld [vmem:[#allocation4 + $0x28] sm:$0xff]  ;;  %244 = vmatprep.subr.bf16.mxu0 %v1935_v1  ;;  %276 = vmatprep.mubr.bf16.mxu0 %v1770_v4  ;;  %v1948_v6 = vld [vmem:[#allocation4 + $0x20] sm:$0xff]  ;;  %v1951_v7 = vld [vmem:[#allocation4 + $0x10] sm:$0xff]  ;;  %s1210_s20 = sadd.s32 %s1742_s13, %s1369_s0  ;;  %s1198_s24 = scalar_lea.sflag [#allocation7], %s1918_s5 }
  0x60   : > { %245 = vmatpush1.bf16.msra.mxu0 %v1937_v2  ;;  %317 = vmatprep.mubr.bf16.mxu1 %v1770_v4  ;;  %v1953_v8 = vld [vmem:[#allocation4 + $0x38] sm:$0xff]  ;;  %v1955_v9 = vld [vmem:[#allocation4 + $0x48] sm:$0xff]  ;;  %v1959_v10 = vld [vmem:[#allocation4 + $0x30] sm:$0xff]  ;;  %s1654_s12 = scalar_lea.vmem %s2295_s21, 1024  ;;  %p2364_p12 = scmp.ne.s32.totalorder %s2359_s25, 0 }
  0x61   : > { %246 = vmatprep.subr.bf16.mxu0 %v1939_v3  ;;  %285 = vmatprep.subr.bf16.mxu1 %v1944_v5  ;;  %v1962_v11 = vld [vmem:[#allocation4 + $0x58] sm:$0xff]  ;;  %v1965_v12 = vld [vmem:[#allocation4 + $0x40] sm:$0xff]  ;;  %v1967_v13 = vld [vmem:[#allocation4 + $0x68] sm:$0xff]  ;;  %p1655_p8 = scmp.ne.s32.totalorder %s2295_s21, %s1654_s12  ;;  %s1771_s13 = smov [#allocation8]  }
  0x62   : > { %286 = vmatpush1.bf16.msra.mxu1 %v1951_v7  ;;  %v1971_v14 = vld [vmem:[#allocation4 + $0x50] sm:$0xff]  ;;  %v1974_v15 = vld [vmem:[#allocation4 + $0x78] sm:$0xff]  ;;  %v1977_v16 = vld [vmem:[#allocation4 + $0x60] sm:$0xff]  ;;  %s1658_s3 = sshll.u32 %s1771_s13, 4  ;;  %s1659_s3 = int_to_ptr.vmem [resolvable:$false] %s1658_s3 }
  0x63   : > { %287 = vmatprep.subr.bf16.mxu1 %v1953_v8  ;;  %v1979_v17 = vld [vmem:[#allocation4 + $0x88] sm:$0xff]  ;;  %v1983_v18 = vld [vmem:[#allocation4 + $0x70] sm:$0xff]  ;;  %v1986_v19 = vld [vmem:[#allocation4 + $0x98] sm:$0xff]  ;;  %p1656_p0 = pnand %p1655_p8, %p2364_p12  ;;  %s1660_s23 = scalar_lea.vmem %s1659_s3, 2048 }
  0x64   : > { %247 = vmatpush1.bf16.msra.mxu0 %v1948_v6  ;;  %v1989_v20 = vld [vmem:[#allocation4 + $0x80] sm:$0xff]  ;;  %v1991_v21 = vld [vmem:[#allocation4 + $0xa8] sm:$0xff]  ;;  %v1995_v22 = vld [vmem:[#allocation4 + $0x90] sm:$0xff]  ;;  %p1661_p13 = scmp.lt.s32.totalorder %s2295_s21, %s1659_s3  ;;  %p1662_p2 = scmp.lt.s32.totalorder %s1660_s23, %s1654_s12 }
  0x65   : > { %248 = vmatprep.subr.bf16.mxu0 %v1955_v9  ;;  %v1998_v23 = vld [vmem:[#allocation4 + $0xb8] sm:$0xff]  ;;  %v2001_v24 = vld [vmem:[#allocation4 + $0xa0] sm:$0xff]  ;;  %v2003_v25 = vld [vmem:[#allocation4 + $0xc8] sm:$0xff]  ;;  %p1657_p11 = pneg %p1656_p0 }
  0x66   : > { %288 = vmatpush1.bf16.msra.mxu1 %v1959_v10  ;;  %v2007_v26 = vld [vmem:[#allocation4 + $0xb0] sm:$0xff]  ;;  %v2010_v27 = vld [vmem:[#allocation4 + $0xd8] sm:$0xff]  ;;  %v2013_v28 = vld [vmem:[#allocation4 + $0xc0] sm:$0xff]  ;;  %p1663_p4 = por %p1662_p2, %p1661_p13 }
  0x67   : > { %289 = vmatprep.subr.bf16.mxu1 %v1962_v11  ;;  %v2015_v29 = vld [vmem:[#allocation4 + $0xe8] sm:$0xff]  ;;  %v2019_v30 = vld [vmem:[#allocation4 + $0xd0] sm:$0xff]  ;;  %v2022_v32 = vld [vmem:[#allocation4 + $0xf8] sm:$0xff] }
  0x68   : > { %249 = vmatpush1.bf16.msra.mxu0 %v1965_v12  ;;  %v235_v31 = vld [vmem:[#allocation2] sm:$0xff]  ;;  %v2025_v33 = vld [vmem:[#allocation4 + $0xe0] sm:$0xff]  ;;  %v238_v40 = vld [vmem:[%s1922_s29 + $0x8] sm:$0xff]  ;;  %p1664_p6 = pnand %p1663_p4, %p1657_p11 }
  0x69   : > { %250 = vmatprep.subr.bf16.mxu0 %v1967_v13  ;;  %v243_v34 = vpack.c.bf16 %v235_v31, %v235_v31  ;;  %v2029_v35 = vld [vmem:[#allocation4 + $0xf0] sm:$0xff]  ;;  %v237_v36 = vld [vmem:[%s1922_s29] sm:$0xff]  ;;  %v242_v48 = vunpack.c.h.bf16 %v238_v40  ;;  %v241_v54 = vunpack.c.l.bf16 %v238_v40  ;;  %v236_v63 = vld [vmem:[#allocation3] sm:$0xff] }
  0x6a   : > { %290 = vmatpush1.bf16.msra.mxu1 %v1971_v14  ;;  %v239_v37 = vunpack.c.l.bf16 %v237_v36  ;;  %v240_v38 = vunpack.c.h.bf16 %v237_v36 }
  0x6b   : > { %291 = vmatprep.subr.bf16.mxu1 %v1974_v15 }
  0x6c   : > { %251 = vmatpush1.bf16.msra.mxu0 %v1977_v16 }
  0x6d   : > { %252 = vmatprep.subr.bf16.mxu0 %v1979_v17 }
  0x6e   : > { %292 = vmatpush1.bf16.msra.mxu1 %v1983_v18 }
  0x6f   : > { %293 = vmatprep.subr.bf16.mxu1 %v1986_v19 }
  0x70   : > { %253 = vmatpush1.bf16.msra.mxu0 %v1989_v20 }
  0x71   : > { %254 = vmatprep.subr.bf16.mxu0 %v1991_v21 }
  0x72   : > { %294 = vmatpush1.bf16.msra.mxu1 %v1995_v22 }
  0x73   : > { %295 = vmatprep.subr.bf16.mxu1 %v1998_v23 }
  0x74   : > { %255 = vmatpush1.bf16.msra.mxu0 %v2001_v24 }
  0x75   : > { %256 = vmatprep.subr.bf16.mxu0 %v2003_v25 }
  0x76   : > { %296 = vmatpush1.bf16.msra.mxu1 %v2007_v26 }
  0x77   : > { %297 = vmatprep.subr.bf16.mxu1 %v2010_v27 }
  0x78   : > { %257 = vmatpush1.bf16.msra.mxu0 %v2013_v28 }
  0x79   : > { %258 = vmatprep.subr.bf16.mxu0 %v2015_v29 }
  0x7a   : > { %298 = vmatpush1.bf16.msra.mxu1 %v2019_v30 }
  0x7b   : > { %299 = vmatprep.subr.bf16.mxu1 %v2022_v32 }
  0x7c   : > { %259 = vmatpush1.bf16.msra.mxu0 %v2025_v33 }
  0x7d   : > { %363 = vmatprep.subr.bf16.mxu0 %v1935_v1 }
  0x7e   : > { %300 = vmatpush1.bf16.msra.mxu1 %v2029_v35 }
  0x7f   : > { %277 = vmatmul.mubr.bf16.vlgmr.msra.gmra.mrb[0].mxu0 %v243_v34  ;;  %404 = vmatprep.subr.bf16.mxu1 %v1944_v5 }
  0x80   : > { %364 = vmatpush1.bf16.msra.mxu0 %v1937_v2  ;;  %395 = vmatprep.mubr.bf16.mxu0 %v1770_v4 }
  0x81   : > { %318 = vmatmul.mubr.bf16.vlgmr.msra.gmra.mrb[0].mxu1 %v243_v34  ;;  %365 = vmatprep.subr.bf16.mxu0 %v1939_v3 }
  0x82   : > { %405 = vmatpush1.bf16.msra.mxu1 %v1951_v7  ;;  %436 = vmatprep.mubr.bf16.mxu1 %v1770_v4 }
  0x83   : > { %406 = vmatprep.subr.bf16.mxu1 %v1953_v8 }
  0x84   : > { %366 = vmatpush1.bf16.msra.mxu0 %v1948_v6 }
  0x85   : > { %367 = vmatprep.subr.bf16.mxu0 %v1955_v9 }
  0x86   : > { %407 = vmatpush1.bf16.msra.mxu1 %v1959_v10 }
  0x87   : > { %408 = vmatprep.subr.bf16.mxu1 %v1962_v11 }
  0x88   : > { %368 = vmatpush1.bf16.msra.mxu0 %v1965_v12 }
  0x89   : > { %369 = vmatprep.subr.bf16.mxu0 %v1967_v13 }
  0x8a   : > { %409 = vmatpush1.bf16.msra.mxu1 %v1971_v14 }
  0x8b   : > { %410 = vmatprep.subr.bf16.mxu1 %v1974_v15 }
  0x8c   : > { %370 = vmatpush1.bf16.msra.mxu0 %v1977_v16 }
  0x8d   : > { %371 = vmatprep.subr.bf16.mxu0 %v1979_v17 }
  0x8e   : > { %411 = vmatpush1.bf16.msra.mxu1 %v1983_v18 }
  0x8f   : > { %412 = vmatprep.subr.bf16.mxu1 %v1986_v19 }
  0x90   : > { %372 = vmatpush1.bf16.msra.mxu0 %v1989_v20 }
  0x91   : > { %373 = vmatprep.subr.bf16.mxu0 %v1991_v21 }
  0x92   : > { %413 = vmatpush1.bf16.msra.mxu1 %v1995_v22 }
  0x93   : > { %414 = vmatprep.subr.bf16.mxu1 %v1998_v23 }
  0x94   : > { %374 = vmatpush1.bf16.msra.mxu0 %v2001_v24 }
  0x95   : > { %375 = vmatprep.subr.bf16.mxu0 %v2003_v25 }
  0x96   : > { %415 = vmatpush1.bf16.msra.mxu1 %v2007_v26 }
  0x97   : > { %416 = vmatprep.subr.bf16.mxu1 %v2010_v27 }
  0x98   : > { %376 = vmatpush1.bf16.msra.mxu0 %v2013_v28 }
  0x99   : > { %377 = vmatprep.subr.bf16.mxu0 %v2015_v29 }
  0x9a   : > { %417 = vmatpush1.bf16.msra.mxu1 %v2019_v30 }
  0x9b   : > { %418 = vmatprep.subr.bf16.mxu1 %v2022_v32 }
  0x9c   : > { %378 = vmatpush1.bf16.msra.mxu0 %v2025_v33 }
  0x9d   : > { %483 = vmatprep.subr.bf16.mxu0 %v1935_v1 }
  0x9e   : > { %419 = vmatpush1.bf16.msra.mxu1 %v2029_v35 }
  0x9f   : > { %524 = vmatprep.subr.bf16.mxu1 %v1944_v5 }
 0x152   : > { %v278_v39 = vpop.f32.mrb[0].mxu0 }
 0x153   : > { %v326_v41 = vadd.f32 %v278_v39, %v239_v37  ;;  %v280_v42 = vpop.f32.mrb[1].mxu0 }
 0x154   : > { %v327_v43 = vadd.f32 %v280_v42, %v240_v38  ;;  %v282_v44 = vpop.f32.mrb[2].mxu0  ;;  %v319_v45 = vpop.f32.mrb[0].mxu1 }
 0x155   : > { %v1317_v46 = vmul.f32 -1.442695, %v326_v41  ;;  %v283_v47 = vpop.f32.mrb[3].mxu0  ;;  %v321_v49 = vpop.f32.mrb[1].mxu1  ;;  %v328_v56 = vadd.f32 %v319_v45, %v241_v54 }
 0x156   : > { %v1318_v50 = vmul.f32 -1.442695, %v327_v43  ;;  %v323_v51 = vpop.f32.mrb[2].mxu1  ;;  %v329_v53 = vadd.f32 %v321_v49, %v242_v48  ;;  %v1320_v43 = vld [vmem:[%s1922_s29 + $0x10] sm:$0xff]  ;;  %v1321_v49 = vld [vmem:[%s1922_s29 + $0x18] sm:$0xff] }
 0x157   : > { %1465 = vpow2.f32 %v1317_v46  ;;  %v324_v52 = vpop.f32.mrb[3].mxu1  ;;  %v358_v44 = vunpack.c.l.bf16 %v1320_v43  ;;  %v359_v45 = vunpack.c.h.bf16 %v1320_v43 }
 0x158   : > { %1467 = vpow2.f32 %v1318_v50  ;;  %v1319_v55 = vmul.f32 -1.442695, %v329_v53 }
 0x15a   : > { %1469 = vpow2.f32 %v1319_v55 }
 0x15b   : > { %1471 = vtanh.f32 %v328_v56 }
 0x161   : > { %v1466_v57 = vpop.eup %1465 }
 0x162   : > { %v1468_v58 = vpop.eup %1467  ;;  %v333_v59 = vadd.f32 1.0, %v1466_v57 }
 0x163   : > { %v339_v60 = vadd.f32 1.0, %v1468_v58 }
 0x164   : > { %1473 = vrcp.f32 %v333_v59  ;;  %v1470_v61 = vpop.eup %1469  ;;  %v361_v59 = vunpack.c.h.bf16 %v1321_v49 }
 0x165   : > { %1475 = vrcp.f32 %v339_v60  ;;  %v1472_v62 = vpop.eup %1471  ;;  %v346_v31 = vadd.f32 1.0, %v1470_v61  ;;  %v360_v61 = vunpack.c.l.bf16 %v1321_v49 }
 0x167   : > { %1477 = vrcp.f32 %v346_v31 }
 0x16e   : > { %v1474_v0 = vpop.eup %1473 }
 0x16f   : > { %v1476_v34 = vpop.eup %1475  ;;  %v350_v36 = vmul.f32 %v1474_v0, %v1472_v62 }
 0x170   : > { %v349_v37 = vmul.f32 %v1476_v34, %v236_v63 }
 0x171   : > { %v1478_v39 = vpop.eup %1477 }
 0x172   : > { %v2071_v38 = vadd.f32 %v350_v36, %v349_v37 }
 0x174   : > { %1479 = vtanh.f32 %v2071_v38 }
 0x17e   : > { %v1480_v40 = vpop.eup %1479 }
 0x17f   : > { %v353_v41 = vmul.f32 %v1480_v40, %v1478_v39 }
 0x181   : > { %354 = vst [vmem:[%s1929_s18] sm:$0xff] %v353_v41  ;;  %v362_v42 = vpack.c.bf16 %v353_v41, %v353_v41 }
 0x183   : > { %396 = vmatmul.mubr.bf16.vlgmr.msra.gmra.mrb[4].mxu0 %v362_v42  ;;  %437 = vmatmul.mubr.bf16.vlgmr.msra.gmra.mrb[4].mxu1 %v362_v42 }
 0x184   : > { %484 = vmatpush1.bf16.msra.mxu0 %v1937_v2  ;;  %525 = vmatpush1.bf16.msra.mxu1 %v1951_v7 }
 0x185   : > { %485 = vmatprep.subr.bf16.mxu0 %v1939_v3  ;;  %526 = vmatprep.subr.bf16.mxu1 %v1953_v8 }
 0x186   : > { %515 = vmatprep.mubr.bf16.mxu0 %v1770_v4  ;;  %556 = vmatprep.mubr.bf16.mxu1 %v1770_v4 }
 0x188   : > { %486 = vmatpush1.bf16.msra.mxu0 %v1948_v6  ;;  %527 = vmatpush1.bf16.msra.mxu1 %v1959_v10 }
 0x189   : > { %487 = vmatprep.subr.bf16.mxu0 %v1955_v9  ;;  %528 = vmatprep.subr.bf16.mxu1 %v1962_v11 }
 0x18c   : > { %488 = vmatpush1.bf16.msra.mxu0 %v1965_v12  ;;  %529 = vmatpush1.bf16.msra.mxu1 %v1971_v14 }
 0x18d   : > { %489 = vmatprep.subr.bf16.mxu0 %v1967_v13  ;;  %530 = vmatprep.subr.bf16.mxu1 %v1974_v15 }
 0x190   : > { %490 = vmatpush1.bf16.msra.mxu0 %v1977_v16  ;;  %531 = vmatpush1.bf16.msra.mxu1 %v1983_v18 }
 0x191   : > { %491 = vmatprep.subr.bf16.mxu0 %v1979_v17  ;;  %532 = vmatprep.subr.bf16.mxu1 %v1986_v19 }
 0x194   : > { %492 = vmatpush1.bf16.msra.mxu0 %v1989_v20  ;;  %533 = vmatpush1.bf16.msra.mxu1 %v1995_v22 }
 0x195   : > { %493 = vmatprep.subr.bf16.mxu0 %v1991_v21  ;;  %534 = vmatprep.subr.bf16.mxu1 %v1998_v23 }
 0x198   : > { %494 = vmatpush1.bf16.msra.mxu0 %v2001_v24  ;;  %535 = vmatpush1.bf16.msra.mxu1 %v2007_v26 }
 0x199   : > { %495 = vmatprep.subr.bf16.mxu0 %v2003_v25  ;;  %536 = vmatprep.subr.bf16.mxu1 %v2010_v27 }
 0x19c   : > { %496 = vmatpush1.bf16.msra.mxu0 %v2013_v28  ;;  %537 = vmatpush1.bf16.msra.mxu1 %v2019_v30 }
 0x19d   : > { %497 = vmatprep.subr.bf16.mxu0 %v2015_v29  ;;  %538 = vmatprep.subr.bf16.mxu1 %v2022_v32 }
 0x1a0   : > { %498 = vmatpush1.bf16.msra.mxu0 %v2025_v33  ;;  %539 = vmatpush1.bf16.msra.mxu1 %v2029_v35 }
 0x1a1   : > { %603 = vmatprep.subr.bf16.mxu0 %v1935_v1  ;;  %644 = vmatprep.subr.bf16.mxu1 %v1944_v5 }
 0x256   : > { %v397_v46 = vpop.f32.mrb[4].mxu0  ;;  %v438_v47 = vpop.f32.mrb[4].mxu1 }
 0x257   : > { %v445_v48 = vadd.f32 %v397_v46, %v358_v44  ;;  %v399_v50 = vpop.f32.mrb[5].mxu0  ;;  %v440_v51 = vpop.f32.mrb[5].mxu1  ;;  %v447_v63 = vadd.f32 %v438_v47, %v360_v61 }
 0x258   : > { %v446_v52 = vadd.f32 %v399_v50, %v359_v45  ;;  %v401_v53 = vpop.f32.mrb[6].mxu0  ;;  %v442_v54 = vpop.f32.mrb[6].mxu1  ;;  %v448_v60 = vadd.f32 %v440_v51, %v361_v59 }
 0x259   : > { %v1322_v55 = vmul.f32 -1.442695, %v445_v48  ;;  %v402_v56 = vpop.f32.mrb[7].mxu0  ;;  %v443_v57 = vpop.f32.mrb[7].mxu1 }
 0x25a   : > { %v1323_v58 = vmul.f32 -1.442695, %v446_v52  ;;  %v1324_v62 = vmul.f32 -1.442695, %v448_v60 }
 0x25b   : > { %1481 = vpow2.f32 %v1322_v55  ;;  %v1327_v55 = vld [vmem:[%s1922_s29 + $0x28] sm:$0xff] }
 0x25c   : > { %1483 = vpow2.f32 %v1323_v58 }
 0x25d   : > { %1485 = vpow2.f32 %v1324_v62 }
 0x25e   : > { %1487 = vtanh.f32 %v447_v63 }
 0x265   : > { %v1482_v0 = vpop.eup %1481 }
 0x266   : > { %v1484_v31 = vpop.eup %1483  ;;  %v452_v34 = vadd.f32 1.0, %v1482_v0 }
 0x267   : > { %v458_v36 = vadd.f32 1.0, %v1484_v31  ;;  %v1486_v37 = vpop.eup %1485  ;;  %v481_v31 = vunpack.c.h.bf16 %v1327_v55 }
 0x268   : > { %1489 = vrcp.f32 %v452_v34  ;;  %v1488_v39 = vpop.eup %1487  ;;  %v465_v43 = vadd.f32 1.0, %v1486_v37 }
 0x269   : > { %1491 = vrcp.f32 %v458_v36  ;;  %v480_v36 = vunpack.c.l.bf16 %v1327_v55 }
 0x26a   : > { %1493 = vrcp.f32 %v465_v43 }
 0x272   : > { %v1490_v40 = vpop.eup %1489 }
 0x273   : > { %v1492_v41 = vpop.eup %1491  ;;  %v469_v42 = vmul.f32 %v1490_v40, %v1488_v39 }
 0x274   : > { %v468_v44 = vmul.f32 %v1492_v41, %v2071_v38  ;;  %v1494_v46 = vpop.eup %1493  ;;  %v1326_v38 = vld [vmem:[%s1922_s29 + $0x20] sm:$0xff] }
 0x275   : > { %v478_v50 = vunpack.c.l.bf16 %v1326_v38  ;;  %v479_v51 = vunpack.c.h.bf16 %v1326_v38 }
 0x276   : > { %v2112_v45 = vadd.f32 %v469_v42, %v468_v44 }
 0x278   : > { %1495 = vtanh.f32 %v2112_v45 }
 0x282   : > { %v1496_v47 = vpop.eup %1495 }
 0x283   : > { %v472_v48 = vmul.f32 %v1496_v47, %v1494_v46 }
 0x285   : > { %1325 = vst [vmem:[%s1929_s18 + $0x8] sm:$0xff] %v472_v48  ;;  %v482_v49 = vpack.c.bf16 %v472_v48, %v472_v48 }
 0x287   : > { %516 = vmatmul.mubr.bf16.vlgmr.msra.gmra.mrb[8].mxu0 %v482_v49  ;;  %557 = vmatmul.mubr.bf16.vlgmr.msra.gmra.mrb[8].mxu1 %v482_v49 }
 0x288   : > { %604 = vmatpush1.bf16.msra.mxu0 %v1937_v2  ;;  %645 = vmatpush1.bf16.msra.mxu1 %v1951_v7 }
 0x289   : > { %605 = vmatprep.subr.bf16.mxu0 %v1939_v3  ;;  %646 = vmatprep.subr.bf16.mxu1 %v1953_v8 }
 0x28a   : > { %635 = vmatprep.mubr.bf16.mxu0 %v1770_v4  ;;  %676 = vmatprep.mubr.bf16.mxu1 %v1770_v4 }
 0x28c   : > { %606 = vmatpush1.bf16.msra.mxu0 %v1948_v6  ;;  %647 = vmatpush1.bf16.msra.mxu1 %v1959_v10 }
 0x28d   : > { %607 = vmatprep.subr.bf16.mxu0 %v1955_v9  ;;  %648 = vmatprep.subr.bf16.mxu1 %v1962_v11 }
 0x290   : > { %608 = vmatpush1.bf16.msra.mxu0 %v1965_v12  ;;  %649 = vmatpush1.bf16.msra.mxu1 %v1971_v14 }
 0x291   : > { %609 = vmatprep.subr.bf16.mxu0 %v1967_v13  ;;  %650 = vmatprep.subr.bf16.mxu1 %v1974_v15 }
 0x294   : > { %610 = vmatpush1.bf16.msra.mxu0 %v1977_v16  ;;  %651 = vmatpush1.bf16.msra.mxu1 %v1983_v18 }
 0x295   : > { %611 = vmatprep.subr.bf16.mxu0 %v1979_v17  ;;  %652 = vmatprep.subr.bf16.mxu1 %v1986_v19 }
 0x298   : > { %612 = vmatpush1.bf16.msra.mxu0 %v1989_v20  ;;  %653 = vmatpush1.bf16.msra.mxu1 %v1995_v22 }
 0x299   : > { %613 = vmatprep.subr.bf16.mxu0 %v1991_v21  ;;  %654 = vmatprep.subr.bf16.mxu1 %v1998_v23 }
 0x29c   : > { %614 = vmatpush1.bf16.msra.mxu0 %v2001_v24  ;;  %655 = vmatpush1.bf16.msra.mxu1 %v2007_v26 }
 0x29d   : > { %615 = vmatprep.subr.bf16.mxu0 %v2003_v25  ;;  %656 = vmatprep.subr.bf16.mxu1 %v2010_v27 }
 0x2a0   : > { %616 = vmatpush1.bf16.msra.mxu0 %v2013_v28  ;;  %657 = vmatpush1.bf16.msra.mxu1 %v2019_v30 }
 0x2a1   : > { %617 = vmatprep.subr.bf16.mxu0 %v2015_v29  ;;  %658 = vmatprep.subr.bf16.mxu1 %v2022_v32 }
 0x2a4   : > { %618 = vmatpush1.bf16.msra.mxu0 %v2025_v33  ;;  %659 = vmatpush1.bf16.msra.mxu1 %v2029_v35 }
 0x2a5   : > { %723 = vmatprep.subr.bf16.mxu0 %v1935_v1  ;;  %764 = vmatprep.subr.bf16.mxu1 %v1944_v5 }
 0x35a   : > { %v517_v52 = vpop.f32.mrb[8].mxu0  ;;  %v558_v53 = vpop.f32.mrb[8].mxu1 }
 0x35b   : > { %v565_v54 = vadd.f32 %v517_v52, %v478_v50  ;;  %v519_v56 = vpop.f32.mrb[9].mxu0  ;;  %v560_v57 = vpop.f32.mrb[9].mxu1  ;;  %v567_v39 = vadd.f32 %v558_v53, %v480_v36 }
 0x35c   : > { %v566_v58 = vadd.f32 %v519_v56, %v479_v51  ;;  %v521_v59 = vpop.f32.mrb[10].mxu0  ;;  %v562_v60 = vpop.f32.mrb[10].mxu1  ;;  %v568_v34 = vadd.f32 %v560_v57, %v481_v31 }
 0x35d   : > { %v1328_v61 = vmul.f32 -1.442695, %v565_v54  ;;  %v522_v62 = vpop.f32.mrb[11].mxu0  ;;  %v563_v63 = vpop.f32.mrb[11].mxu1 }
 0x35e   : > { %v1329_v0 = vmul.f32 -1.442695, %v566_v58  ;;  %v1330_v37 = vmul.f32 -1.442695, %v568_v34 }
 0x35f   : > { %1497 = vpow2.f32 %v1328_v61  ;;  %v1333_v61 = vld [vmem:[%s1922_s29 + $0x38] sm:$0xff] }
 0x360   : > { %1499 = vpow2.f32 %v1329_v0 }
 0x361   : > { %1501 = vpow2.f32 %v1330_v37 }
 0x362   : > { %1503 = vtanh.f32 %v567_v39 }
 0x369   : > { %v1498_v40 = vpop.eup %1497 }
 0x36a   : > { %v1500_v41 = vpop.eup %1499  ;;  %v572_v42 = vadd.f32 1.0, %v1498_v40 }
 0x36b   : > { %v578_v43 = vadd.f32 1.0, %v1500_v41  ;;  %v1502_v44 = vpop.eup %1501  ;;  %v601_v41 = vunpack.c.h.bf16 %v1333_v61 }
 0x36c   : > { %1505 = vrcp.f32 %v572_v42  ;;  %v1504_v46 = vpop.eup %1503  ;;  %v585_v38 = vadd.f32 1.0, %v1502_v44 }
 0x36d   : > { %1507 = vrcp.f32 %v578_v43  ;;  %v600_v43 = vunpack.c.l.bf16 %v1333_v61 }
 0x36e   : > { %1509 = vrcp.f32 %v585_v38 }
 0x376   : > { %v1506_v47 = vpop.eup %1505 }
 0x377   : > { %v1508_v48 = vpop.eup %1507  ;;  %v589_v49 = vmul.f32 %v1506_v47, %v1504_v46 }
 0x378   : > { %v588_v50 = vmul.f32 %v1508_v48, %v2112_v45  ;;  %v1510_v52 = vpop.eup %1509  ;;  %v1332_v45 = vld [vmem:[%s1922_s29 + $0x30] sm:$0xff] }
 0x379   : > { %v598_v56 = vunpack.c.l.bf16 %v1332_v45  ;;  %v599_v57 = vunpack.c.h.bf16 %v1332_v45 }
 0x37a   : > { %v2153_v51 = vadd.f32 %v589_v49, %v588_v50 }
 0x37c   : > { %1511 = vtanh.f32 %v2153_v51 }
 0x386   : > { %v1512_v53 = vpop.eup %1511 }
 0x387   : > { %v592_v54 = vmul.f32 %v1512_v53, %v1510_v52 }
 0x389   : > { %1331 = vst [vmem:[%s1929_s18 + $0x10] sm:$0xff] %v592_v54  ;;  %v602_v55 = vpack.c.bf16 %v592_v54, %v592_v54 }
 0x38b   : > { %636 = vmatmul.mubr.bf16.vlgmr.msra.gmra.mrb[12].mxu0 %v602_v55  ;;  %677 = vmatmul.mubr.bf16.vlgmr.msra.gmra.mrb[12].mxu1 %v602_v55 }
 0x38c   : > { %724 = vmatpush1.bf16.msra.mxu0 %v1937_v2  ;;  %765 = vmatpush1.bf16.msra.mxu1 %v1951_v7 }
 0x38d   : > { %725 = vmatprep.subr.bf16.mxu0 %v1939_v3  ;;  %766 = vmatprep.subr.bf16.mxu1 %v1953_v8 }
 0x38e   : > { %755 = vmatprep.mubr.bf16.mxu0 %v1770_v4  ;;  %796 = vmatprep.mubr.bf16.mxu1 %v1770_v4 }
 0x390   : > { %726 = vmatpush1.bf16.msra.mxu0 %v1948_v6  ;;  %767 = vmatpush1.bf16.msra.mxu1 %v1959_v10 }
 0x391   : > { %727 = vmatprep.subr.bf16.mxu0 %v1955_v9  ;;  %768 = vmatprep.subr.bf16.mxu1 %v1962_v11 }
 0x394   : > { %728 = vmatpush1.bf16.msra.mxu0 %v1965_v12  ;;  %769 = vmatpush1.bf16.msra.mxu1 %v1971_v14 }
 0x395   : > { %729 = vmatprep.subr.bf16.mxu0 %v1967_v13  ;;  %770 = vmatprep.subr.bf16.mxu1 %v1974_v15 }
 0x398   : > { %730 = vmatpush1.bf16.msra.mxu0 %v1977_v16  ;;  %771 = vmatpush1.bf16.msra.mxu1 %v1983_v18 }
 0x399   : > { %731 = vmatprep.subr.bf16.mxu0 %v1979_v17  ;;  %772 = vmatprep.subr.bf16.mxu1 %v1986_v19 }
 0x39c   : > { %732 = vmatpush1.bf16.msra.mxu0 %v1989_v20  ;;  %773 = vmatpush1.bf16.msra.mxu1 %v1995_v22 }
 0x39d   : > { %733 = vmatprep.subr.bf16.mxu0 %v1991_v21  ;;  %774 = vmatprep.subr.bf16.mxu1 %v1998_v23 }
 0x3a0   : > { %734 = vmatpush1.bf16.msra.mxu0 %v2001_v24  ;;  %775 = vmatpush1.bf16.msra.mxu1 %v2007_v26 }
 0x3a1   : > { %735 = vmatprep.subr.bf16.mxu0 %v2003_v25  ;;  %776 = vmatprep.subr.bf16.mxu1 %v2010_v27 }
 0x3a4   : > { %736 = vmatpush1.bf16.msra.mxu0 %v2013_v28  ;;  %777 = vmatpush1.bf16.msra.mxu1 %v2019_v30 }
 0x3a5   : > { %737 = vmatprep.subr.bf16.mxu0 %v2015_v29  ;;  %778 = vmatprep.subr.bf16.mxu1 %v2022_v32 }
 0x3a8   : > { %738 = vmatpush1.bf16.msra.mxu0 %v2025_v33  ;;  %779 = vmatpush1.bf16.msra.mxu1 %v2029_v35 }
 0x3a9   : > { %843 = vmatprep.subr.bf16.mxu0 %v1935_v1  ;;  %884 = vmatprep.subr.bf16.mxu1 %v1944_v5 }
 0x45e   : > { %v637_v58 = vpop.f32.mrb[12].mxu0  ;;  %v678_v59 = vpop.f32.mrb[12].mxu1 }
 0x45f   : > { %v685_v60 = vadd.f32 %v637_v58, %v598_v56  ;;  %v639_v62 = vpop.f32.mrb[13].mxu0  ;;  %v680_v63 = vpop.f32.mrb[13].mxu1  ;;  %v687_v46 = vadd.f32 %v678_v59, %v600_v43 }
 0x460   : > { %v686_v0 = vadd.f32 %v639_v62, %v599_v57  ;;  %v641_v31 = vpop.f32.mrb[14].mxu0  ;;  %v682_v34 = vpop.f32.mrb[14].mxu1  ;;  %v688_v42 = vadd.f32 %v680_v63, %v601_v41 }
 0x461   : > { %v1334_v36 = vmul.f32 -1.442695, %v685_v60  ;;  %v642_v37 = vpop.f32.mrb[15].mxu0  ;;  %v683_v39 = vpop.f32.mrb[15].mxu1 }
 0x462   : > { %v1335_v40 = vmul.f32 -1.442695, %v686_v0  ;;  %v1336_v44 = vmul.f32 -1.442695, %v688_v42 }
 0x463   : > { %1513 = vpow2.f32 %v1334_v36  ;;  %v1339_v36 = vld [vmem:[%s1922_s29 + $0x48] sm:$0xff] }
 0x464   : > { %1515 = vpow2.f32 %v1335_v40 }
 0x465   : > { %1517 = vpow2.f32 %v1336_v44 }
 0x466   : > { %1519 = vtanh.f32 %v687_v46 }
 0x46d   : > { %v1514_v47 = vpop.eup %1513 }
 0x46e   : > { %v1516_v48 = vpop.eup %1515  ;;  %v692_v49 = vadd.f32 1.0, %v1514_v47 }
 0x46f   : > { %v698_v38 = vadd.f32 1.0, %v1516_v48  ;;  %v1518_v50 = vpop.eup %1517  ;;  %v721_v48 = vunpack.c.h.bf16 %v1339_v36 }
 0x470   : > { %1521 = vrcp.f32 %v692_v49  ;;  %v1520_v52 = vpop.eup %1519  ;;  %v705_v45 = vadd.f32 1.0, %v1518_v50  ;;  %v720_v49 = vunpack.c.l.bf16 %v1339_v36 }
 0x471   : > { %1523 = vrcp.f32 %v698_v38 }
 0x472   : > { %1525 = vrcp.f32 %v705_v45 }
 0x47a   : > { %v1522_v53 = vpop.eup %1521 }
 0x47b   : > { %v1524_v54 = vpop.eup %1523  ;;  %v709_v55 = vmul.f32 %v1522_v53, %v1520_v52 }
 0x47c   : > { %v708_v56 = vmul.f32 %v1524_v54, %v2153_v51  ;;  %v1526_v58 = vpop.eup %1525  ;;  %v1338_v51 = vld [vmem:[%s1922_s29 + $0x40] sm:$0xff] }
 0x47d   : > { %v718_v62 = vunpack.c.l.bf16 %v1338_v51  ;;  %v719_v63 = vunpack.c.h.bf16 %v1338_v51 }
 0x47e   : > { %v2194_v57 = vadd.f32 %v709_v55, %v708_v56 }
 0x480   : > { %1527 = vtanh.f32 %v2194_v57 }
 0x48a   : > { %v1528_v59 = vpop.eup %1527 }
 0x48b   : > { %v712_v60 = vmul.f32 %v1528_v59, %v1526_v58 }
 0x48d   : > { %1337 = vst [vmem:[%s1929_s18 + $0x18] sm:$0xff] %v712_v60  ;;  %v722_v61 = vpack.c.bf16 %v712_v60, %v712_v60 }
 0x48f   : > { %756 = vmatmul.mubr.bf16.vlgmr.msra.gmra.mrb[16].mxu0 %v722_v61  ;;  %797 = vmatmul.mubr.bf16.vlgmr.msra.gmra.mrb[16].mxu1 %v722_v61 }
 0x490   : > { %844 = vmatpush1.bf16.msra.mxu0 %v1937_v2  ;;  %885 = vmatpush1.bf16.msra.mxu1 %v1951_v7 }
 0x491   : > { %845 = vmatprep.subr.bf16.mxu0 %v1939_v3  ;;  %886 = vmatprep.subr.bf16.mxu1 %v1953_v8 }
 0x492   : > { %875 = vmatprep.mubr.bf16.mxu0 %v1770_v4  ;;  %916 = vmatprep.mubr.bf16.mxu1 %v1770_v4 }
 0x494   : > { %846 = vmatpush1.bf16.msra.mxu0 %v1948_v6  ;;  %887 = vmatpush1.bf16.msra.mxu1 %v1959_v10 }
 0x495   : > { %847 = vmatprep.subr.bf16.mxu0 %v1955_v9  ;;  %888 = vmatprep.subr.bf16.mxu1 %v1962_v11 }
 0x498   : > { %848 = vmatpush1.bf16.msra.mxu0 %v1965_v12  ;;  %889 = vmatpush1.bf16.msra.mxu1 %v1971_v14 }
 0x499   : > { %849 = vmatprep.subr.bf16.mxu0 %v1967_v13  ;;  %890 = vmatprep.subr.bf16.mxu1 %v1974_v15 }
 0x49c   : > { %850 = vmatpush1.bf16.msra.mxu0 %v1977_v16  ;;  %891 = vmatpush1.bf16.msra.mxu1 %v1983_v18 }
 0x49d   : > { %851 = vmatprep.subr.bf16.mxu0 %v1979_v17  ;;  %892 = vmatprep.subr.bf16.mxu1 %v1986_v19 }
 0x4a0   : > { %852 = vmatpush1.bf16.msra.mxu0 %v1989_v20  ;;  %893 = vmatpush1.bf16.msra.mxu1 %v1995_v22 }
 0x4a1   : > { %853 = vmatprep.subr.bf16.mxu0 %v1991_v21  ;;  %894 = vmatprep.subr.bf16.mxu1 %v1998_v23 }
 0x4a4   : > { %854 = vmatpush1.bf16.msra.mxu0 %v2001_v24  ;;  %895 = vmatpush1.bf16.msra.mxu1 %v2007_v26 }
 0x4a5   : > { %855 = vmatprep.subr.bf16.mxu0 %v2003_v25  ;;  %896 = vmatprep.subr.bf16.mxu1 %v2010_v27 }
 0x4a8   : > { %856 = vmatpush1.bf16.msra.mxu0 %v2013_v28  ;;  %897 = vmatpush1.bf16.msra.mxu1 %v2019_v30 }
 0x4a9   : > { %857 = vmatprep.subr.bf16.mxu0 %v2015_v29  ;;  %898 = vmatprep.subr.bf16.mxu1 %v2022_v32 }
 0x4ac   : > { %858 = vmatpush1.bf16.msra.mxu0 %v2025_v33  ;;  %899 = vmatpush1.bf16.msra.mxu1 %v2029_v35 }
 0x4ad   : > { %963 = vmatprep.subr.bf16.mxu0 %v1935_v1  ;;  %1004 = vmatprep.subr.bf16.mxu1 %v1944_v5 }
 0x562   : > { %v757_v0 = vpop.f32.mrb[16].mxu0  ;;  %v798_v31 = vpop.f32.mrb[16].mxu1 }
 0x563   : > { %v805_v34 = vadd.f32 %v757_v0, %v718_v62  ;;  %v759_v37 = vpop.f32.mrb[17].mxu0  ;;  %v800_v39 = vpop.f32.mrb[17].mxu1  ;;  %v807_v50 = vadd.f32 %v798_v31, %v720_v49  ;;  %v1600_v49 = vld [vmem:[#allocation4 + $0x48] sm:$0xff] }
 0x564   : > { %v806_v40 = vadd.f32 %v759_v37, %v719_v63  ;;  %v761_v41 = vpop.f32.mrb[18].mxu0  ;;  %v802_v42 = vpop.f32.mrb[18].mxu1  ;;  %v808_v1 = vadd.f32 %v800_v39, %v721_v48  ;;  %v1598_v48 = vld [vmem:[#allocation4 + $0x20] sm:$0xff] }
 0x565   : > { %v1340_v43 = vmul.f32 -1.442695, %v805_v34  ;;  %v762_v44 = vpop.f32.mrb[19].mxu0  ;;  %v803_v46 = vpop.f32.mrb[19].mxu1 }
 0x566   : > { %v1341_v47 = vmul.f32 -1.442695, %v806_v40  ;;  %v1342_v38 = vmul.f32 -1.442695, %v808_v1  ;;  %v1595_v44 = vld [vmem:[#allocation4 + $0x10] sm:$0xff]  ;;  %v1596_v46 = vld [vmem:[#allocation4 + $0x28] sm:$0xff] }
 0x567   : > { %1529 = vpow2.f32 %v1340_v43  ;;  %v1594_v43 = vld [vmem:[#allocation4] sm:$0xff]  ;;  %v1599_v1 = vld [vmem:[#allocation4 + $0x30] sm:$0xff] }
 0x568   : > { %1531 = vpow2.f32 %v1341_v47  ;;  %v1597_v47 = vld [vmem:[#allocation4 + $0x38] sm:$0xff] }
 0x569   : > { %1533 = vpow2.f32 %v1342_v38  ;;  %v1601_v38 = vld [vmem:[#allocation4 + $0x58] sm:$0xff] }
 0x56a   : > { %1535 = vtanh.f32 %v807_v50  ;;  %v1602_v50 = vld [vmem:[#allocation4 + $0x40] sm:$0xff] }
 0x571   : > { %v1530_v52 = vpop.eup %1529 }
 0x572   : > { %v1532_v53 = vpop.eup %1531  ;;  %v812_v54 = vadd.f32 1.0, %v1530_v52  ;;  %v1603_v52 = vld [vmem:[#allocation4 + $0x50] sm:$0xff] }
 0x573   : > { %v818_v55 = vadd.f32 1.0, %v1532_v53  ;;  %v1534_v45 = vpop.eup %1533  ;;  %v1604_v53 = vld [vmem:[#allocation4 + $0x68] sm:$0xff] }
 0x574   : > { %1537 = vrcp.f32 %v812_v54  ;;  %v1536_v56 = vpop.eup %1535  ;;  %v825_v61 = vadd.f32 1.0, %v1534_v45  ;;  %v1605_v54 = vld [vmem:[#allocation4 + $0x78] sm:$0xff]  ;;  %v1607_v45 = vld [vmem:[#allocation4 + $0x70] sm:$0xff] }
 0x575   : > { %1539 = vrcp.f32 %v818_v55  ;;  %v1606_v55 = vld [vmem:[#allocation4 + $0x60] sm:$0xff] }
 0x576   : > { %1541 = vrcp.f32 %v825_v61  ;;  %v1613_v61 = vld [vmem:[#allocation4 + $0xb8] sm:$0xff] }
 0x57e   : > { %v1538_v58 = vpop.eup %1537 }
 0x57f   : > { %v1540_v59 = vpop.eup %1539  ;;  %v829_v60 = vmul.f32 %v1538_v58, %v1536_v56  ;;  %v1609_v56 = vld [vmem:[#allocation4 + $0x98] sm:$0xff]  ;;  %v1610_v58 = vld [vmem:[#allocation4 + $0x80] sm:$0xff] }
 0x580   : > { %v828_v51 = vmul.f32 %v1540_v59, %v2194_v57  ;;  %v1542_v63 = vpop.eup %1541  ;;  %v1611_v59 = vld [vmem:[#allocation4 + $0x90] sm:$0xff] }
 0x582   : > { %v2235_v62 = vadd.f32 %v829_v60, %v828_v51  ;;  %v1612_v60 = vld [vmem:[#allocation4 + $0xa8] sm:$0xff]  ;;  %v1614_v51 = vld [vmem:[#allocation4 + $0xa0] sm:$0xff] }
 0x584   : > { %1543 = vtanh.f32 %v2235_v62 }
 0x58e   : > { %v1544_v0 = vpop.eup %1543 }
 0x58f   : > { %v832_v31 = vmul.f32 %v1544_v0, %v1542_v63  ;;  %v1616_v63 = vld [vmem:[#allocation4 + $0xc8] sm:$0xff]  ;;  %v1617_v0 = vld [vmem:[#allocation4 + $0xd8] sm:$0xff] }
 0x591   : > { %1343 = vst [vmem:[%s1929_s18 + $0x20] sm:$0xff] %v832_v31  ;;  %v842_v34 = vpack.c.bf16 %v832_v31, %v832_v31  ;;  %v1618_v31 = vld [vmem:[#allocation4 + $0xc0] sm:$0xff] }
 0x593   : > { %876 = vmatmul.mubr.bf16.vlgmr.msra.gmra.mrb[20].mxu0 %v842_v34  ;;  %917 = vmatmul.mubr.bf16.vlgmr.msra.gmra.mrb[20].mxu1 %v842_v34  ;;  %v1619_v34 = vld [vmem:[#allocation4 + $0xd0] sm:$0xff] }
 0x594   : > { %964 = vmatpush1.bf16.msra.mxu0 %v1937_v2  ;;  %1005 = vmatpush1.bf16.msra.mxu1 %v1951_v7  ;;  %v1593_v2 = vld [vmem:[#allocation4 + $0x8] sm:$0xff] }
 0x595   : > { %965 = vmatprep.subr.bf16.mxu0 %v1939_v3  ;;  %1006 = vmatprep.subr.bf16.mxu1 %v1953_v8  ;;  %v1344_v3 = vld [vmem:[%s1922_s29 + $0x50] sm:$0xff] }
 0x596   : > { %995 = vmatprep.mubr.bf16.mxu0 %v1770_v4  ;;  %1036 = vmatprep.mubr.bf16.mxu1 %v1770_v4  ;;  %v839_v7 = vunpack.c.h.bf16 %v1344_v3 }
 0x598   : > { %966 = vmatpush1.bf16.msra.mxu0 %v1948_v6  ;;  %1007 = vmatpush1.bf16.msra.mxu1 %v1959_v10  ;;  %v838_v6 = vunpack.c.l.bf16 %v1344_v3  ;;  %v1621_v3 = vld [vmem:[#allocation4 + $0xf8] sm:$0xff] }
 0x599   : > { %967 = vmatprep.subr.bf16.mxu0 %v1955_v9  ;;  %1008 = vmatprep.subr.bf16.mxu1 %v1962_v11  ;;  %v1345_v11 = vld [vmem:[%s1922_s29 + $0x58] sm:$0xff] }
 0x59c   : > { %968 = vmatpush1.bf16.msra.mxu0 %v1965_v12  ;;  %1009 = vmatpush1.bf16.msra.mxu1 %v1971_v14 }
 0x59d   : > { %969 = vmatprep.subr.bf16.mxu0 %v1967_v13  ;;  %1010 = vmatprep.subr.bf16.mxu1 %v1974_v15 }
 0x5a0   : > { %970 = vmatpush1.bf16.msra.mxu0 %v1977_v16  ;;  %1011 = vmatpush1.bf16.msra.mxu1 %v1983_v18 }
 0x5a1   : > { %971 = vmatprep.subr.bf16.mxu0 %v1979_v17  ;;  %1012 = vmatprep.subr.bf16.mxu1 %v1986_v19 }
 0x5a4   : > { %972 = vmatpush1.bf16.msra.mxu0 %v1989_v20  ;;  %1013 = vmatpush1.bf16.msra.mxu1 %v1995_v22  ;;  %v840_v22 = vunpack.c.l.bf16 %v1345_v11 }
 0x5a5   : > { %973 = vmatprep.subr.bf16.mxu0 %v1991_v21  ;;  %1014 = vmatprep.subr.bf16.mxu1 %v1998_v23  ;;  %v841_v21 = vunpack.c.h.bf16 %v1345_v11 }
 0x5a8   : > { %974 = vmatpush1.bf16.msra.mxu0 %v2001_v24  ;;  %1015 = vmatpush1.bf16.msra.mxu1 %v2007_v26 }
 0x5a9   : > { %975 = vmatprep.subr.bf16.mxu0 %v2003_v25  ;;  %1016 = vmatprep.subr.bf16.mxu1 %v2010_v27 }
 0x5ac   : > { %976 = vmatpush1.bf16.msra.mxu0 %v2013_v28  ;;  %1017 = vmatpush1.bf16.msra.mxu1 %v2019_v30 }
 0x5ad   : > { %977 = vmatprep.subr.bf16.mxu0 %v2015_v29  ;;  %1018 = vmatprep.subr.bf16.mxu1 %v2022_v32 }
 0x5b0   : > { %978 = vmatpush1.bf16.msra.mxu0 %v2025_v33  ;;  %1019 = vmatpush1.bf16.msra.mxu1 %v2029_v35 }
 0x5b1   : > { %1083 = vmatprep.subr.bf16.mxu0 %v1593_v2  ;;  %1124 = vmatprep.subr.bf16.mxu1 %v1944_v5  ;;  %v1620_v2 = vld [vmem:[#allocation4 + $0xe8] sm:$0xff] }
 0x666   : > { %v877_v8 = vpop.f32.mrb[20].mxu0  ;;  %v918_v9 = vpop.f32.mrb[20].mxu1 }
 0x667   : > { %v925_v10 = vadd.f32 %v877_v8, %v838_v6  ;;  %v879_v12 = vpop.f32.mrb[21].mxu0  ;;  %v920_v13 = vpop.f32.mrb[21].mxu1  ;;  %v927_v24 = vadd.f32 %v918_v9, %v840_v22  ;;  %v1622_v6 = vld [vmem:[#allocation4 + $0xe0] sm:$0xff] }
 0x668   : > { %v926_v14 = vadd.f32 %v879_v12, %v839_v7  ;;  %v881_v15 = vpop.f32.mrb[22].mxu0  ;;  %v922_v16 = vpop.f32.mrb[22].mxu1  ;;  %v928_v5 = vadd.f32 %v920_v13, %v841_v21  ;;  %v1623_v7 = vld [vmem:[#allocation4 + $0xf0] sm:$0xff]  ;;  %v1350_v8 = vld [vmem:[%s1922_s29 + $0x60] sm:$0xff] }
 0x669   : > { %v1346_v17 = vmul.f32 -1.442695, %v925_v10  ;;  %v882_v18 = vpop.f32.mrb[23].mxu0  ;;  %v923_v19 = vpop.f32.mrb[23].mxu1  ;;  %v958_v9 = vunpack.c.l.bf16 %v1350_v8  ;;  %v959_v10 = vunpack.c.h.bf16 %v1350_v8 }
 0x66a   : > { %v1347_v20 = vmul.f32 -1.442695, %v926_v14  ;;  %v1348_v23 = vmul.f32 -1.442695, %v928_v5  ;;  %v1351_v14 = vld [vmem:[%s1922_s29 + $0x68] sm:$0xff] }
 0x66b   : > { %1545 = vpow2.f32 %v1346_v17 }
 0x66c   : > { %1547 = vpow2.f32 %v1347_v20 }
 0x66d   : > { %1549 = vpow2.f32 %v1348_v23  ;;  %v961_v23 = vunpack.c.h.bf16 %v1351_v14 }
 0x66e   : > { %1551 = vtanh.f32 %v927_v24 }
 0x675   : > { %v1546_v25 = vpop.eup %1545 }
 0x676   : > { %v1548_v26 = vpop.eup %1547  ;;  %v932_v27 = vadd.f32 1.0, %v1546_v25  ;;  %v960_v25 = vunpack.c.l.bf16 %v1351_v14 }
 0x677   : > { %v938_v28 = vadd.f32 1.0, %v1548_v26  ;;  %v1550_v29 = vpop.eup %1549 }
 0x678   : > { %1553 = vrcp.f32 %v932_v27  ;;  %v1552_v30 = vpop.eup %1551  ;;  %v945_v57 = vadd.f32 1.0, %v1550_v29 }
 0x679   : > { %1555 = vrcp.f32 %v938_v28 }
 0x67a   : > { %1557 = vrcp.f32 %v945_v57 }
 0x682   : > { %v1554_v32 = vpop.eup %1553 }
 0x683   : > { %v1556_v33 = vpop.eup %1555  ;;  %v949_v35 = vmul.f32 %v1554_v32, %v1552_v30 }
 0x684   : > { %v948_v36 = vmul.f32 %v1556_v33, %v2235_v62  ;;  %v1558_v39 = vpop.eup %1557  ;;  %v1615_v62 = vld [vmem:[#allocation4 + $0xb0] sm:$0xff] }
 0x686   : > { %v2275_v37 = vadd.f32 %v949_v35, %v948_v36 }
 0x688   : > { %1559 = vtanh.f32 %v2275_v37 }
 0x692   : > { %v1560_v40 = vpop.eup %1559 }
 0x693   : > { %v952_v41 = vmul.f32 %v1560_v40, %v1558_v39 }
 0x695   : > { %1349 = vst [vmem:[%s1929_s18 + $0x28] sm:$0xff] %v952_v41  ;;  %v962_v42 = vpack.c.bf16 %v952_v41, %v952_v41 }
 0x697   : > { %996 = vmatmul.mubr.bf16.vlgmr.msra.gmra.mrb[24].mxu0 %v962_v42  ;;  %1037 = vmatmul.mubr.bf16.vlgmr.msra.gmra.mrb[24].mxu1 %v962_v42 }
 0x698   : > { %1084 = vmatpush1.bf16.msra.mxu0 %v1594_v43  ;;  %1125 = vmatpush1.bf16.msra.mxu1 %v1595_v44 }
 0x699   : > { %1085 = vmatprep.subr.bf16.mxu0 %v1596_v46  ;;  %1126 = vmatprep.subr.bf16.mxu1 %v1597_v47 }
 0x69a   : > { %1115 = vmatprep.mubr.bf16.mxu0 %v1770_v4  ;;  %1156 = vmatprep.mubr.bf16.mxu1 %v1770_v4  ;;  %v1608_v4 = vld [vmem:[#allocation4 + $0x88] sm:$0xff] }
 0x69c   : > { %1086 = vmatpush1.bf16.msra.mxu0 %v1598_v48  ;;  %1127 = vmatpush1.bf16.msra.mxu1 %v1599_v1  ;;  %v1356_v48 = vld [vmem:[%s1922_s29 + $0x70] sm:$0xff] }
 0x69d   : > { %1087 = vmatprep.subr.bf16.mxu0 %v1600_v49  ;;  %1128 = vmatprep.subr.bf16.mxu1 %v1601_v38  ;;  %v1078_v1 = vunpack.c.l.bf16 %v1356_v48  ;;  %v1079_v49 = vunpack.c.h.bf16 %v1356_v48 }
 0x6a0   : > { %1088 = vmatpush1.bf16.msra.mxu0 %v1602_v50  ;;  %1129 = vmatpush1.bf16.msra.mxu1 %v1603_v52 }
 0x6a1   : > { %1089 = vmatprep.subr.bf16.mxu0 %v1604_v53  ;;  %1130 = vmatprep.subr.bf16.mxu1 %v1605_v54  ;;  %v1357_v53 = vld [vmem:[%s1922_s29 + $0x78] sm:$0xff]  ;;  %s1365_s29 = sshll.u32 %s1210_s20, 7 }
 0x6a2   : > { %s2293_s26 = scalar_lea.hbm %s2352_s2, %s1365_s29 }
 0x6a4   : > { %1090 = vmatpush1.bf16.msra.mxu0 %v1606_v55  ;;  %1131 = vmatpush1.bf16.msra.mxu1 %v1607_v45 }
 0x6a5   : > { %1091 = vmatprep.subr.bf16.mxu0 %v1608_v4  ;;  %1132 = vmatprep.subr.bf16.mxu1 %v1609_v56 }
 0x6a8   : > { %1092 = vmatpush1.bf16.msra.mxu0 %v1610_v58  ;;  %1133 = vmatpush1.bf16.msra.mxu1 %v1611_v59 }
 0x6a9   : > { %1093 = vmatprep.subr.bf16.mxu0 %v1612_v60  ;;  %1134 = vmatprep.subr.bf16.mxu1 %v1613_v61  ;;  %v1081_v61 = vunpack.c.h.bf16 %v1357_v53 }
 0x6ac   : > { %1094 = vmatpush1.bf16.msra.mxu0 %v1614_v51  ;;  %1135 = vmatpush1.bf16.msra.mxu1 %v1615_v62  ;;  %v1080_v62 = vunpack.c.l.bf16 %v1357_v53 }
 0x6ad   : > { %1095 = vmatprep.subr.bf16.mxu0 %v1616_v63  ;;  %1136 = vmatprep.subr.bf16.mxu1 %v1617_v0 }
 0x6b0   : > { %1096 = vmatpush1.bf16.msra.mxu0 %v1618_v31  ;;  %1137 = vmatpush1.bf16.msra.mxu1 %v1619_v34 }
 0x6b1   : > { %1097 = vmatprep.subr.bf16.mxu0 %v1620_v2  ;;  %1138 = vmatprep.subr.bf16.mxu1 %v1621_v3 }
 0x6b4   : > { %1098 = vmatpush1.bf16.msra.mxu0 %v1622_v6  ;;  %1139 = vmatpush1.bf16.msra.mxu1 %v1623_v7 }
 0x76a   : > { %v997_v11 = vpop.f32.mrb[24].mxu0  ;;  %v1038_v12 = vpop.f32.mrb[24].mxu1 }
 0x76b   : > { %v1045_v13 = vadd.f32 %v997_v11, %v958_v9  ;;  %v999_v15 = vpop.f32.mrb[25].mxu0  ;;  %v1040_v16 = vpop.f32.mrb[25].mxu1  ;;  %v1047_v27 = vadd.f32 %v1038_v12, %v960_v25 }
 0x76c   : > { %v1046_v17 = vadd.f32 %v999_v15, %v959_v10  ;;  %v1001_v18 = vpop.f32.mrb[26].mxu0  ;;  %v1042_v19 = vpop.f32.mrb[26].mxu1  ;;  %v1048_v24 = vadd.f32 %v1040_v16, %v961_v23 }
 0x76d   : > { %v1352_v20 = vmul.f32 -1.442695, %v1045_v13  ;;  %v1002_v21 = vpop.f32.mrb[27].mxu0  ;;  %v1043_v5 = vpop.f32.mrb[27].mxu1 }
 0x76e   : > { %v1353_v22 = vmul.f32 -1.442695, %v1046_v17  ;;  %v1354_v26 = vmul.f32 -1.442695, %v1048_v24 }
 0x76f   : > { %1561 = vpow2.f32 %v1352_v20 }
 0x770   : > { %1563 = vpow2.f32 %v1353_v22 }
 0x771   : > { %1565 = vpow2.f32 %v1354_v26 }
 0x772   : > { %1567 = vtanh.f32 %v1047_v27 }
 0x779   : > { %v1562_v28 = vpop.eup %1561 }
 0x77a   : > { %v1564_v29 = vpop.eup %1563  ;;  %v1052_v30 = vadd.f32 1.0, %v1562_v28 }
 0x77b   : > { %v1058_v32 = vadd.f32 1.0, %v1564_v29  ;;  %v1566_v33 = vpop.eup %1565 }
 0x77c   : > { %1569 = vrcp.f32 %v1052_v30  ;;  %v1568_v35 = vpop.eup %1567  ;;  %v1065_v40 = vadd.f32 1.0, %v1566_v33 }
 0x77d   : > { %1571 = vrcp.f32 %v1058_v32 }
 0x77e   : > { %1573 = vrcp.f32 %v1065_v40 }
 0x786   : > { %v1570_v57 = vpop.eup %1569 }
 0x787   : > { %v1572_v36 = vpop.eup %1571  ;;  %v1069_v39 = vmul.f32 %v1570_v57, %v1568_v35 }
 0x788   : > { %v1068_v41 = vmul.f32 %v1572_v36, %v2275_v37  ;;  %v1574_v43 = vpop.eup %1573 }
 0x78a   : > { %v1070_v42 = vadd.f32 %v1069_v39, %v1068_v41 }
 0x78c   : > { %1575 = vtanh.f32 %v1070_v42 }
 0x796   : > { %v1576_v44 = vpop.eup %1575 }
 0x797   : > { %v1072_v46 = vmul.f32 %v1576_v44, %v1574_v43 }
 0x799   : > { %1355 = vst [vmem:[%s1929_s18 + $0x30] sm:$0xff] %v1072_v46  ;;  %v1082_v47 = vpack.c.bf16 %v1072_v46, %v1072_v46 }
 0x79b   : > { %1116 = vmatmul.mubr.bf16.vlgmr.msra.gmra.mrb[28].mxu0 %v1082_v47  ;;  %1157 = vmatmul.mubr.bf16.vlgmr.msra.gmra.mrb[28].mxu1 %v1082_v47 }
 0x86e   : > { %v1117_v38 = vpop.f32.mrb[28].mxu0  ;;  %v1158_v50 = vpop.f32.mrb[28].mxu1 }
 0x86f   : > { %v1165_v52 = vadd.f32 %v1117_v38, %v1078_v1  ;;  %v1119_v54 = vpop.f32.mrb[29].mxu0  ;;  %v1160_v37 = vpop.f32.mrb[29].mxu1  ;;  %v1167_v0 = vadd.f32 %v1158_v50, %v1080_v62 }
 0x870   : > { %v1166_v55 = vadd.f32 %v1119_v54, %v1079_v49  ;;  %v1121_v45 = vpop.f32.mrb[30].mxu0  ;;  %v1162_v4 = vpop.f32.mrb[30].mxu1  ;;  %v1168_v51 = vadd.f32 %v1160_v37, %v1081_v61 }
 0x871   : > { %v1358_v56 = vmul.f32 -1.442695, %v1165_v52  ;;  %v1122_v58 = vpop.f32.mrb[31].mxu0  ;;  %v1163_v59 = vpop.f32.mrb[31].mxu1 }
 0x872   : > { %v1359_v60 = vmul.f32 -1.442695, %v1166_v55  ;;  %v1360_v63 = vmul.f32 -1.442695, %v1168_v51 }
 0x873   : > { %1577 = vpow2.f32 %v1358_v56 }
 0x874   : > { %1579 = vpow2.f32 %v1359_v60 }
 0x875   : > { %1581 = vpow2.f32 %v1360_v63 }
 0x876   : > { %1583 = vtanh.f32 %v1167_v0 }
 0x87d   : > { %v1578_v31 = vpop.eup %1577 }
 0x87e   : > { %v1580_v34 = vpop.eup %1579  ;;  %v1172_v2 = vadd.f32 1.0, %v1578_v31 }
 0x87f   : > { %v1178_v3 = vadd.f32 1.0, %v1580_v34  ;;  %v1582_v6 = vpop.eup %1581 }
 0x880   : > { %1585 = vrcp.f32 %v1172_v2  ;;  %v1584_v7 = vpop.eup %1583  ;;  %v1185_v11 = vadd.f32 1.0, %v1582_v6 }
 0x881   : > { %1587 = vrcp.f32 %v1178_v3 }
 0x882   : > { %1589 = vrcp.f32 %v1185_v11 }
 0x88a   : > { %v1586_v8 = vpop.eup %1585 }
 0x88b   : > { %v1588_v9 = vpop.eup %1587  ;;  %v1189_v10 = vmul.f32 %v1586_v8, %v1584_v7 }
 0x88c   : > { %v1188_v12 = vmul.f32 %v1588_v9, %v1070_v42  ;;  %v1590_v14 = vpop.eup %1589 }
 0x88e   : > { %v1190_v13 = vadd.f32 %v1189_v10, %v1188_v12 }
 0x890   : > { %1591 = vtanh.f32 %v1190_v13  ;;  %1196 = vst [vmem:[#allocation3] sm:$0xff] %v1190_v13 }
 0x89a   : > { %v1592_v15 = vpop.eup %1591 }
 0x89b   : > { %v1192_v16 = vmul.f32 %v1592_v15, %v1590_v14 }
 0x89d   : > { %1361 = vst [vmem:[%s1929_s18 + $0x38] sm:$0xff] %v1192_v16  ;;  %1195 = vst [vmem:[#allocation2] sm:$0xff] %v1192_v16 }
 0x89e   : > { %1667 = shalt.err (!%p1664_p6)
}
 0x89f   : > { %s1668_s18 = scalar_lea.hbm %s2293_s26, 1024  ;;  %s1672_s8 = scalar_lea.hbm %s2352_s2, 4096 }
 0x8a0   : > { %p1669_p7 = scmp.ne.s32.totalorder %s2293_s26, %s1668_s18  ;;  %p1673_p3 = scmp.lt.u32.totalorder %s2293_s26, %s2352_s2 }
 0x8a1   : > { %p1674_p5 = scmp.lt.u32.totalorder %s1672_s8, %s1668_s18  ;;  %p1676_p8 = scmp.lt.u32.totalorder %s1668_s18, %s2293_s26 }
 0x8a2   : > { %p1670_p10 = pnand %p1669_p7, %p2364_p12 }
 0x8a3   : > { %p1675_p9 = por %p1674_p5, %p1673_p3 }
 0x8a4   : > { %p1671_p1 = pneg %p1670_p10 }
 0x8a5   : > { %p1677_p0 = por %p1676_p8, %p1675_p9 }
 0x8a7   : > { %p1678_p11 = pnand %p1677_p0, %p1671_p1 }
 0x8a9   : > { %1681 = shalt.err (!%p1678_p11)
}
 0x8aa   : > { %s1772_s0 = smov 128   ;;  %s1773_s20 = smov 256  }
 0x8ab   : > { %s1774_s29 = smov 8  }
 0x8ac   : > { %1372 = dma.vmem_to_hbm [thread:$0]  (%p2364_p12), %s2295_s21, 1024, %s2293_s26, %s1198_s24, %s1772_s0, %s1773_s20, %s1774_s29  }
 0x8ad PF: > { %p1383_p13 = scmp.ge.s32.totalorder %s1754_s16, 2  ;;  %s1228_s17 = sand.u32 1, %s1726_s9  }
 0x8ae   : > { %p2365_p2 = scmp.ne.s32.totalorder %s2360_s28, 0  ;;  %s1229_s22 = scalar_lea.sflag [#allocation7], %s1228_s17 }
 0x8b0   : > { %p1379_p4 = pnand %p1383_p13, %p2365_p2 }
 0x8b2   : > { %1721 = dma.done.wait (!%p1379_p4), %s1229_s22, 1024  }
 0x8b3   : > { %1723 = vsyncadd (!%p1379_p4), %s1229_s22, 4294966272  ;;  %s18_s16 = sadd.s32 1, %s1754_s16   ;;  %s2366_s25 = sld [smem:[#allocation15_spill]] }
 0x8b4   : > { %p15_p6 = scmp.ge.s32.totalorder %s18_s16, 6   ;;  %s2367_s9 = smov %s1730_s10 }
 0x8b5   : > { %s2368_s10 = smov %s1734_s11  ;;  %s2369_s11 = smov %s1868_s30 }
 0x8b6   : > { %s2370_s12 = smov %s1746_s14  ;;  %s2371_s13 = smov %s1750_s15 }
 0x8b7   : > { %s2372_s14 = smov %s2375_s19  ;;  %17 = sbr.rel (!%p15_p6) target bundleno = 9 (0x9), region = 96 }
 0x8b9   : > { %s2373_s15 = smov %s2366_s25 }
 0x8be   :  { %1234 = vsyncpa [#allocation6], 1 }
 0x8bf   :  { %1236 = vsyncpa [#allocation6 + $0x1], 1 }
 0x8c0   :  { %1237 = vsyncpa [#allocation7], 1 }
 0x8c1   :  { %1239 = vsyncpa [#allocation7 + $0x1], 1 }

</bundles_post_ra>
